<compile_context>
chip_gen: v7x
topology: tpu7x:2x2x1
jax: 0.10.0
libtpu: 0.0.40
codegen_flags: <defaults>
</compile_context>

<pallas_src>
import functools

import jax
import jax.numpy as jnp
from jax.experimental import pallas as pl
from jax.experimental.pallas import tpu as pltpu


def _round_up(x, m):
    return ((x + m - 1) // m) * m


def _largest_aligned_divisor(n, cap):
    """Largest multiple of 128 that divides `n` (a multiple of 128) and is <= cap."""
    best = 128
    d = 128
    cap = min(cap, n)
    while d <= cap:
        if n % d == 0:
            best = d
        d += 128
    return best


def _rgcn_layer_kernel(*refs, apply_relu, apply_bias, tile_s, n_pad):
    """One grid step: acc += A~[b, dst_tile, src_tile] @ XW[b, src_tile]; finalize at the end.

    grid = (dst_tiles, num_bases, src_tiles).  acc_ref (tile_m, f_pad) f32 is resident across
    the (basis, src) reduction; the output block is written once, in its storage dtype.
    """
    if apply_bias:
        a_ref, xw_ref, bias_ref, o_ref, acc_ref = refs
    else:
        a_ref, xw_ref, o_ref, acc_ref = refs
        bias_ref = None

    b = pl.program_id(1)
    s = pl.program_id(2)
    nb = pl.num_programs(1)
    ns = pl.num_programs(2)

    @pl.when((b == 0) & (s == 0))
    def _():
        acc_ref[...] = jnp.zeros_like(acc_ref)

    # Slice the VMEM-resident, flattened (B*n_pad, f_pad) XW tensor for this (basis, src tile).
    off = pl.multiple_of(b * n_pad + s * tile_s, 128)
    xw = xw_ref[pl.ds(off, tile_s), :]
    # Single MXU matmul per step (bf16 x bf16 -> f32 accumulate on the production path).
    acc_ref[...] += jnp.dot(a_ref[...], xw, preferred_element_type=jnp.float32)

    @pl.when((b == nb - 1) & (s == ns - 1))
    def _():
        out = acc_ref[...]
        if apply_bias:
            out = out + bias_ref[...]        # (1, f_pad) broadcast over rows
        if apply_relu:
            out = jnp.maximum(out, 0.0)
        o_ref[...] = out.astype(o_ref.dtype)


def _rgcn_layer(a_stack, xw_flat, bias, *, apply_relu, apply_bias, out_dtype, tile_m, tile_s):
    """One layer:  out = sum_b A~_b @ XW_b  (+bias) (+relu), emitted in `out_dtype`.

    a_stack: (B, n_pad, n_pad)    xw_flat: (B*n_pad, f_pad)    bias: (1, f_pad) or None
    """
    B, n_pad, _ = a_stack.shape
    f_pad = xw_flat.shape[1]
    grid = (n_pad // tile_m, B, n_pad // tile_s)

    in_specs = [
        # per-basis adjacency tile (squeezed leading dim -> 2-D ref in the kernel)
        pl.BlockSpec((None, tile_m, tile_s), lambda i, b, s: (b, i, s)),
        # pre-multiplied X@W, fully VMEM-resident (constant index map -> fetched once)
        pl.BlockSpec((B * n_pad, f_pad), lambda i, b, s: (0, 0)),
    ]
    args = [a_stack, xw_flat]
    if apply_bias:
        in_specs.append(pl.BlockSpec((1, f_pad), lambda i, b, s: (0, 0)))
        args.append(bias)

    in_bytes = jnp.dtype(a_stack.dtype).itemsize
    out_bytes = jnp.dtype(out_dtype).itemsize
    vmem_est = (2 * tile_m * tile_s * in_bytes        # double-buffered A~ tiles
                + 2 * B * n_pad * f_pad * in_bytes    # resident XW (counted x2 conservatively)
                + 2 * tile_m * f_pad * out_bytes      # output block
                + tile_m * f_pad * 4                  # f32 accumulator scratch
                + f_pad * 4)                          # bias
    vmem_limit = min(100 * 1024 * 1024,
                     max(32 * 1024 * 1024, int(vmem_est) + 8 * 1024 * 1024))

    kern = functools.partial(_rgcn_layer_kernel, apply_relu=apply_relu,
                             apply_bias=apply_bias, tile_s=tile_s, n_pad=n_pad)
    return pl.pallas_call(
        kern,
        out_shape=jax.ShapeDtypeStruct((n_pad, f_pad), out_dtype),
        grid_spec=pltpu.PrefetchScalarGridSpec(
            num_scalar_prefetch=0,
            grid=grid,
            in_specs=in_specs,
            # output block depends only on the dst tile -> written back once per dst tile
            out_specs=pl.BlockSpec((tile_m, f_pad), lambda i, b, s: (i, 0)),
            scratch_shapes=[pltpu.VMEM((tile_m, f_pad), jnp.float32)],
        ),
        compiler_params=pltpu.CompilerParams(
            dimension_semantics=("parallel", "arbitrary", "arbitrary"),
            vmem_limit_bytes=vmem_limit,
        ),
    )(*args)


def rel_graph_conv_two_layer(a_norm, x, weight, h_bias, w_comp=None, *,
                             compute_dtype=jnp.bfloat16,
                             tile_m_target=256,
                             a_tile_budget_bytes=16 * 1024 * 1024):
    """Full forward of RelGraphConvTwoLayer (call under jax.jit).

    a_norm : (R, N, N) right-normalized per-relation dense adjacency A[r, dst, src]
    x      : (N, F) node features
    weight : (num_bases, F, F) basis matrices if `w_comp` given, else per-relation (R, F, F)
    h_bias : (F,)
    w_comp : optional (R, num_bases) basis coefficients (WeightBasis)
    """
    _, N, _ = a_norm.shape
    F = x.shape[1]

    # Fold the basis decomposition into the adjacency so the kernel reduces over num_bases:
    #   sum_r A_r X W_r = sum_b (sum_r c_rb A_r) X B_b
    if w_comp is not None:
        a_stack = jnp.einsum('rb,rds->bds', w_comp, a_norm)
    else:
        a_stack = a_norm
    B = a_stack.shape[0]
    w_stack = weight.astype(jnp.float32)                      # (B, F, F)

    # Padding: features to a multiple of 128 (lane-dense output stores, full MXU rows), nodes
    # to a multiple of the dst tile.  Zero padding is exact for this operator.
    f_pad = _round_up(F, 128)
    n128 = _round_up(N, 128)
    tile_m = min(_round_up(tile_m_target, 128), n128)
    # v7x has 2 TensorCores: keep >= 2 dst tiles when possible so the parallel axis shards.
    if n128 >= 2 * 128 and n128 // tile_m < 2:
        tile_m = max(128, ((n128 // 2) // 128) * 128)
    n_pad = _round_up(N, tile_m)

    in_bytes = jnp.dtype(compute_dtype).itemsize
    s_cap = max(128, a_tile_budget_bytes // (2 * tile_m * in_bytes))
    tile_s = _largest_aligned_divisor(n_pad, s_cap)           # whole src dim when it fits

    # Fold + pad + cast all happen under the caller's jit -> one fused pre-pass, A~ lands in
    # HBM once, already in the compute dtype.
    a_p = jnp.pad(a_stack, ((0, 0), (0, n_pad - N), (0, n_pad - N))).astype(compute_dtype)
    x_p = jnp.pad(x, ((0, n_pad - N), (0, f_pad - F))).astype(jnp.float32)
    w_p = jnp.pad(w_stack, ((0, 0), (0, f_pad - F), (0, f_pad - F)))
    b_p = jnp.pad(h_bias.reshape(1, F), ((0, 0), (0, f_pad - F))).astype(jnp.float32)

    # Layer 1:  H = relu( sum_b A~_b (X B_b) );  dropout(p=0) identity.  XW1 is tiny (B*N*F^2).
    xw1 = jnp.einsum('nf,bfo->bno', x_p, w_p).astype(compute_dtype).reshape(B * n_pad, f_pad)
    h = _rgcn_layer(a_p, xw1, None, apply_relu=True, apply_bias=False,
                    out_dtype=compute_dtype, tile_m=tile_m, tile_s=tile_s)

    # Layer 2:  Y = sum_b A~_b (H B_b) + h_bias;  activation=None.
    xw2 = jnp.einsum('nf,bfo->bno', h.astype(jnp.float32), w_p
                     ).astype(compute_dtype).reshape(B * n_pad, f_pad)
    y = _rgcn_layer(a_p, xw2, b_p, apply_relu=False, apply_bias=True,
                    out_dtype=jnp.float32, tile_m=tile_m, tile_s=tile_s)
    return y[:N, :F]


def _xavier_uniform(key, shape, gain):
    fan_in, fan_out = shape[-2], shape[-1]
    limit = gain * jnp.sqrt(6.0 / (fan_in + fan_out))
    return jax.random.uniform(key, shape, jnp.float32, -limit, limit)


def _reference(a_norm, x, w_rel, h_bias):
    h = jnp.maximum(jnp.einsum('rds,sf,rfo->do', a_norm, x, w_rel), 0.0)
    return jnp.einsum('rds,sf,rfo->do', a_norm, h, w_rel) + h_bias


if __name__ == "__main__":
    key = jax.random.PRNGKey(0)
    k_adj, k_x, k_basis, k_comp, k_bias = jax.random.split(key, 5)

    # Small deterministic problem (non-multiples of 128 to exercise padding + tiling).
    num_nodes = 300
    in_feat = out_feat = 32          # weight sharing between conv1/conv2 requires in == out
    num_rels = 3                     # rel_names = ["r0", "r1", "r2"]
    num_bases = 2                    # < num_rels -> WeightBasis path
    gain_relu = float(jnp.sqrt(2.0))

    # Random relational graph, dense adjacency A[r, dst, src], right-normalized (norm='right').
    adj = jax.random.bernoulli(k_adj, 0.3, (num_rels, num_nodes, num_nodes)).astype(jnp.float32)
    in_deg = jnp.clip(adj.sum(axis=-1, keepdims=True), 1.0, None)
    a_norm = adj / in_deg

    x = jax.random.normal(k_x, (num_nodes, in_feat), jnp.float32)

    # WeightBasis parameters: basis (B, in, out), coefficients (R, B).
    basis = _xavier_uniform(k_basis, (num_bases, in_feat, out_feat), gain_relu)
    w_comp = _xavier_uniform(k_comp, (num_rels, num_bases), 1.0)

    # Module initializes h_bias to zeros; use a nonzero bias here so the bias-add path is tested.
    h_bias = 0.1 * jax.random.normal(k_bias, (out_feat,), jnp.float32)

    # Pure-JAX reference (per-relation weights reconstructed from the basis).
    w_rel = jnp.einsum('rb,bio->rio', w_comp, basis)
    ref = _reference(a_norm, x, w_rel, h_bias)

    # 1) f32 compute path: tight correctness check of the kernel logic.
    fwd_f32 = jax.jit(functools.partial(rel_graph_conv_two_layer,
                                        compute_dtype=jnp.float32, tile_m_target=128))
    out_f32 = jax.block_until_ready(fwd_f32(a_norm, x, basis, h_bias, w_comp))
    assert out_f32.shape == (num_nodes, out_feat)
    assert jnp.allclose(out_f32, ref, atol=2e-4, rtol=2e-4), "f32 mismatch vs. JAX reference"

    # 2) bf16 compute path (production config): bf16 A~/XW/H, f32 accumulation.
    fwd_bf16 = jax.jit(functools.partial(rel_graph_conv_two_layer,
                                         compute_dtype=jnp.bfloat16))
    out_bf16 = jax.block_until_ready(fwd_bf16(a_norm, x, basis, h_bias, w_comp))
    assert out_bf16.shape == (num_nodes, out_feat)
    assert jnp.allclose(out_bf16, ref, atol=5e-2, rtol=5e-2), "bf16 mismatch vs. JAX reference"

    print("KERNEL_OK")
</pallas_src>

<mosaic_0001>
module attributes {stable_mosaic.version = 11 : i64} {
  func.func @_rgcn_layer_kernel(%arg0: i32, %arg1: i32, %arg2: i32, %arg3: memref<1x128x384xf32, #tpu.memory_space<vmem>>, %arg4: memref<768x128xf32, #tpu.memory_space<vmem>>, %arg5: memref<128x128xf32, #tpu.memory_space<vmem>>, %arg6: memref<128x128xf32, #tpu.memory_space<vmem>>) attributes {dimension_semantics = [#tpu.dimension_semantics<parallel>, #tpu.dimension_semantics<arbitrary>, #tpu.dimension_semantics<arbitrary>], iteration_bounds = array<i64: 3, 2, 1>, scalar_prefetch = 0 : i64, scratch_operands = 1 : i64, tpu.core_type = #tpu.core_type<tc>, window_params = [{transform_indices = @transform_0, window_bounds = array<i64: 1, 128, 384>}, {pipeline_mode = #tpu.pipeline_mode<synchronous>, transform_indices = @transform_1, window_bounds = array<i64: 768, 128>}, {transform_indices = @transform_2, window_bounds = array<i64: 128, 128>}]} {
    %c0_i32 = arith.constant 0 : i32
    %0 = arith.cmpi eq, %arg1, %c0_i32 : i32
    %c0_i32_0 = arith.constant 0 : i32
    %1 = arith.cmpi eq, %arg2, %c0_i32_0 : i32
    %2 = arith.andi %0, %1 : i1
    %3 = arith.extui %2 : i1 to i32
    %c0_i32_1 = arith.constant 0 : i32
    %4 = arith.cmpi ne, %3, %c0_i32_1 : i32
    scf.if %4 {
      %cst_12 = arith.constant 0.000000e+00 : f32
      %22 = vector.broadcast %cst_12 : f32 to vector<128x128xf32>
      %c0_13 = arith.constant 0 : index
      %c0_14 = arith.constant 0 : index
      %23 = vector.load %arg6[%c0_13, %c0_14] : memref<128x128xf32, #tpu.memory_space<vmem>>, vector<128x128xf32>
      tpu.vector_store %arg6[%c0_13, %c0_14], %22 {strides = array<i32>} : memref<128x128xf32, #tpu.memory_space<vmem>>, vector<128x128xf32>,
    } else {
    }
    %c384_i32 = arith.constant 384 : i32
    %5 = arith.muli %arg1, %c384_i32 : i32
    %c384_i32_2 = arith.constant 384 : i32
    %6 = arith.muli %arg2, %c384_i32_2 : i32
    %7 = arith.addi %5, %6 : i32
    %8 = tpu.assume_multiple %7, 128 : i32
    %9 = arith.index_cast %8 : i32 to index
    %c0 = arith.constant 0 : index
    %10 = vector.load %arg4[%9, %c0] : memref<768x128xf32, #tpu.memory_space<vmem>>, vector<384x128xf32>
    %c0_3 = arith.constant 0 : index
    %c0_4 = arith.constant 0 : index
    %11 = vector.load %arg6[%c0_3, %c0_4] : memref<128x128xf32, #tpu.memory_space<vmem>>, vector<128x128xf32>
    %c0_5 = arith.constant 0 : index
    %c0_6 = arith.constant 0 : index
    %c0_7 = arith.constant 0 : index
    %12 = vector.load %arg3[%c0_5, %c0_6, %c0_7] : memref<1x128x384xf32, #tpu.memory_space<vmem>>, vector<1x128x384xf32>
    %13 = vector.shape_cast %12 : vector<1x128x384xf32> to vector<128x384xf32>
    %cst = arith.constant dense<0.000000e+00> : vector<128x128xf32>
    %14 = tpu.matmul %13, %10, %cst {dimension_numbers = #tpu.dot_dimension_numbers<[1], [0], [0], [1], [0, 0, 1, 1], [], []>} : vector<128x384xf32>, vector<384x128xf32>, vector<128x128xf32> -> vector<128x128xf32>
    %15 = arith.addf %11, %14 : vector<128x128xf32>
    %c0_8 = arith.constant 0 : index
    %c0_9 = arith.constant 0 : index
    %16 = vector.load %arg6[%c0_8, %c0_9] : memref<128x128xf32, #tpu.memory_space<vmem>>, vector<128x128xf32>
    tpu.vector_store %arg6[%c0_8, %c0_9], %15 {strides = array<i32>} : memref<128x128xf32, #tpu.memory_space<vmem>>, vector<128x128xf32>,
    %c1_i32 = arith.constant 1 : i32
    %17 = arith.cmpi eq, %arg1, %c1_i32 : i32
    %c0_i32_10 = arith.constant 0 : i32
    %18 = arith.cmpi eq, %arg2, %c0_i32_10 : i32
    %19 = arith.andi %17, %18 : i1
    %20 = arith.extui %19 : i1 to i32
    %c0_i32_11 = arith.constant 0 : i32
    %21 = arith.cmpi ne, %20, %c0_i32_11 : i32
    scf.if %21 {
      %c0_12 = arith.constant 0 : index
      %c0_13 = arith.constant 0 : index
      %22 = vector.load %arg6[%c0_12, %c0_13] : memref<128x128xf32, #tpu.memory_space<vmem>>, vector<128x128xf32>
      %cst_14 = arith.constant 0.000000e+00 : f32
      %23 = vector.broadcast %cst_14 : f32 to vector<128x128xf32>
      %24 = arith.maximumf %22, %23 : vector<128x128xf32>
      %c0_15 = arith.constant 0 : index
      %c0_16 = arith.constant 0 : index
      %25 = vector.load %arg5[%c0_15, %c0_16] : memref<128x128xf32, #tpu.memory_space<vmem>>, vector<128x128xf32>
      tpu.vector_store %arg5[%c0_15, %c0_16], %24 {strides = array<i32>} : memref<128x128xf32, #tpu.memory_space<vmem>>, vector<128x128xf32>,
    } else {
    }
    return
  }
  func.func @transform_0(%arg0: i32, %arg1: i32, %arg2: i32) -> (i32, i32, i32) {
    %c0_i32 = arith.constant 0 : i32
    return %arg1, %arg0, %arg2 : i32, i32, i32
  }
  func.func @transform_1(%arg0: i32, %arg1: i32, %arg2: i32) -> (i32, i32) {
    %c0_i32 = arith.constant 0 : i32
    %c0_i32_0 = arith.constant 0 : i32
    %c0_i32_1 = arith.constant 0 : i32
    return %c0_i32, %c0_i32_0 : i32, i32
  }
  func.func @transform_2(%arg0: i32, %arg1: i32, %arg2: i32) -> (i32, i32) {
    %c0_i32 = arith.constant 0 : i32
    %c0_i32_0 = arith.constant 0 : i32
    return %arg0, %c0_i32 : i32, i32
  }
}

module attributes {stable_mosaic.version = 11 : i64} {
  func.func @_rgcn_layer_kernel(%arg0: i32, %arg1: i32, %arg2: i32, %arg3: memref<1x128x384xf32, #tpu.memory_space<vmem>>, %arg4: memref<768x128xf32, #tpu.memory_space<vmem>>, %arg5: memref<1x128xf32, #tpu.memory_space<vmem>>, %arg6: memref<128x128xf32, #tpu.memory_space<vmem>>, %arg7: memref<128x128xf32, #tpu.memory_space<vmem>>) attributes {dimension_semantics = [#tpu.dimension_semantics<parallel>, #tpu.dimension_semantics<arbitrary>, #tpu.dimension_semantics<arbitrary>], iteration_bounds = array<i64: 3, 2, 1>, scalar_prefetch = 0 : i64, scratch_operands = 1 : i64, tpu.core_type = #tpu.core_type<tc>, window_params = [{transform_indices = @transform_0, window_bounds = array<i64: 1, 128, 384>}, {pipeline_mode = #tpu.pipeline_mode<synchronous>, transform_indices = @transform_1, window_bounds = array<i64: 768, 128>}, {pipeline_mode = #tpu.pipeline_mode<synchronous>, transform_indices = @transform_2, window_bounds = array<i64: 1, 128>}, {transform_indices = @transform_3, window_bounds = array<i64: 128, 128>}]} {
    %c0_i32 = arith.constant 0 : i32
    %0 = arith.cmpi eq, %arg1, %c0_i32 : i32
    %c0_i32_0 = arith.constant 0 : i32
    %1 = arith.cmpi eq, %arg2, %c0_i32_0 : i32
    %2 = arith.andi %0, %1 : i1
    %3 = arith.extui %2 : i1 to i32
    %c0_i32_1 = arith.constant 0 : i32
    %4 = arith.cmpi ne, %3, %c0_i32_1 : i32
    scf.if %4 {
      %cst_12 = arith.constant 0.000000e+00 : f32
      %22 = vector.broadcast %cst_12 : f32 to vector<128x128xf32>
      %c0_13 = arith.constant 0 : index
      %c0_14 = arith.constant 0 : index
      %23 = vector.load %arg7[%c0_13, %c0_14] : memref<128x128xf32, #tpu.memory_space<vmem>>, vector<128x128xf32>
      tpu.vector_store %arg7[%c0_13, %c0_14], %22 {strides = array<i32>} : memref<128x128xf32, #tpu.memory_space<vmem>>, vector<128x128xf32>,
    } else {
    }
    %c384_i32 = arith.constant 384 : i32
    %5 = arith.muli %arg1, %c384_i32 : i32
    %c384_i32_2 = arith.constant 384 : i32
    %6 = arith.muli %arg2, %c384_i32_2 : i32
    %7 = arith.addi %5, %6 : i32
    %8 = tpu.assume_multiple %7, 128 : i32
    %9 = arith.index_cast %8 : i32 to index
    %c0 = arith.constant 0 : index
    %10 = vector.load %arg4[%9, %c0] : memref<768x128xf32, #tpu.memory_space<vmem>>, vector<384x128xf32>
    %c0_3 = arith.constant 0 : index
    %c0_4 = arith.constant 0 : index
    %11 = vector.load %arg7[%c0_3, %c0_4] : memref<128x128xf32, #tpu.memory_space<vmem>>, vector<128x128xf32>
    %c0_5 = arith.constant 0 : index
    %c0_6 = arith.constant 0 : index
    %c0_7 = arith.constant 0 : index
    %12 = vector.load %arg3[%c0_5, %c0_6, %c0_7] : memref<1x128x384xf32, #tpu.memory_space<vmem>>, vector<1x128x384xf32>
    %13 = vector.shape_cast %12 : vector<1x128x384xf32> to vector<128x384xf32>
    %cst = arith.constant dense<0.000000e+00> : vector<128x128xf32>
    %14 = tpu.matmul %13, %10, %cst {dimension_numbers = #tpu.dot_dimension_numbers<[1], [0], [0], [1], [0, 0, 1, 1], [], []>} : vector<128x384xf32>, vector<384x128xf32>, vector<128x128xf32> -> vector<128x128xf32>
    %15 = arith.addf %11, %14 : vector<128x128xf32>
    %c0_8 = arith.constant 0 : index
    %c0_9 = arith.constant 0 : index
    %16 = vector.load %arg7[%c0_8, %c0_9] : memref<128x128xf32, #tpu.memory_space<vmem>>, vector<128x128xf32>
    tpu.vector_store %arg7[%c0_8, %c0_9], %15 {strides = array<i32>} : memref<128x128xf32, #tpu.memory_space<vmem>>, vector<128x128xf32>,
    %c1_i32 = arith.constant 1 : i32
    %17 = arith.cmpi eq, %arg1, %c1_i32 : i32
    %c0_i32_10 = arith.constant 0 : i32
    %18 = arith.cmpi eq, %arg2, %c0_i32_10 : i32
    %19 = arith.andi %17, %18 : i1
    %20 = arith.extui %19 : i1 to i32
    %c0_i32_11 = arith.constant 0 : i32
    %21 = arith.cmpi ne, %20, %c0_i32_11 : i32
    scf.if %21 {
      %c0_12 = arith.constant 0 : index
      %c0_13 = arith.constant 0 : index
      %22 = vector.load %arg7[%c0_12, %c0_13] : memref<128x128xf32, #tpu.memory_space<vmem>>, vector<128x128xf32>
      %c0_14 = arith.constant 0 : index
      %c0_15 = arith.constant 0 : index
      %23 = vector.load %arg5[%c0_14, %c0_15] : memref<1x128xf32, #tpu.memory_space<vmem>>, vector<1x128xf32>
      %24 = vector.broadcast %23 : vector<1x128xf32> to vector<128x128xf32>
      %25 = arith.addf %22, %24 : vector<128x128xf32>
      %c0_16 = arith.constant 0 : index
      %c0_17 = arith.constant 0 : index
      %26 = vector.load %arg6[%c0_16, %c0_17] : memref<128x128xf32, #tpu.memory_space<vmem>>, vector<128x128xf32>
      tpu.vector_store %arg6[%c0_16, %c0_17], %25 {strides = array<i32>} : memref<128x128xf32, #tpu.memory_space<vmem>>, vector<128x128xf32>,
    } else {
    }
    return
  }
  func.func @transform_0(%arg0: i32, %arg1: i32, %arg2: i32) -> (i32, i32, i32) {
    %c0_i32 = arith.constant 0 : i32
    return %arg1, %arg0, %arg2 : i32, i32, i32
  }
  func.func @transform_1(%arg0: i32, %arg1: i32, %arg2: i32) -> (i32, i32) {
    %c0_i32 = arith.constant 0 : i32
    %c0_i32_0 = arith.constant 0 : i32
    %c0_i32_1 = arith.constant 0 : i32
    return %c0_i32, %c0_i32_0 : i32, i32
  }
  func.func @transform_2(%arg0: i32, %arg1: i32, %arg2: i32) -> (i32, i32) {
    %c0_i32 = arith.constant 0 : i32
    %c0_i32_0 = arith.constant 0 : i32
    %c0_i32_1 = arith.constant 0 : i32
    return %c0_i32, %c0_i32_0 : i32, i32
  }
  func.func @transform_3(%arg0: i32, %arg1: i32, %arg2: i32) -> (i32, i32) {
    %c0_i32 = arith.constant 0 : i32
    %c0_i32_0 = arith.constant 0 : i32
    return %arg0, %c0_i32 : i32, i32
  }
}

</mosaic_0001>

<bundles_post_ra>
// kernel: rel_graph_conv_two_layer.3
= control target key start
LH: loop header
LB: loop body
LE: loop exit
PB: predicated region body
PF: predicated region fallthrough
CT: control target
= control target key end

     0   :  { %s1185_s12 = smov 0   ;;  %s1187_s13 = smov 0   ;;  %s1369_s0 = inlined_call_operand.vmem [shape: f32[2,384,384], index: 0, kind: input, shape index: {}]   ;;  %s1370_s1 = inlined_call_operand.vmem [shape: f32[768,128], index: 1, kind: input, shape index: {}]   ;;  %s1371_s2 = inlined_call_operand.vmem [shape: f32[1,128], index: 2, kind: input, shape index: {}]   ;;  %s1372_s3 = inlined_call_operand.vmem [shape: f32[384,128], index: 3, kind: output, shape index: {}]  }
   0x1   :  { %s1189_s14 = smov 0   ;;  %s1191_s15 = smov 0  }
   0x2   :  { %s1193_s16 = smov 0  }
   0x3 LB: > { %s28_s17 = sadd.s32 1, %s1154_s14  ;;  %s32_s18 = sadd.s32 1, %s1158_s15  ;;  %s1162_s16 = sphi %s1193_s16, %s13_s16   ;;  %s1158_s15 = sphi %s1191_s15, %s1376_s15   ;;  %s1154_s14 = sphi %s1189_s14, %s1375_s14   ;;  %s1150_s13 = sphi %s1187_s13, %s1374_s13   ;;  %s1146_s12 = sphi %s1185_s12, %s1373_s12  }
   0x4   : > { %p30_p0 = scmp.ge.s32.totalorder %s28_s17, 2  ;;  %p837_p1 = scmp.ge.s32.totalorder %s1162_s16, 1 }
   0x5   : > { %p171_p2 = scmp.lt.s32.totalorder %s1162_s16, 7 }
   0x6   : > { %s1378_s17 = smov (%p30_p0, %s28_s17), 0  ;;  %s1380_s18 = smov (!%p30_p0, %s32_s18), %s1158_s15 }
   0x7   : > { %p172_p3 = pnand %p837_p1, %p171_p2  ;;  %p34_p4 = scmp.ge.s32.totalorder %s1380_s18, 3 }
   0x8   : > { %s838_s19 = sshll.u32 (!%p172_p3), %s1150_s13, 4  ;;  %p206_p5 = scmp.lt.s32.totalorder (!%p172_p3), %s1146_s12, 1 }
   0x9   : > { %s1382_s18 = smov (%p34_p4, %s1380_s18), 0  ;;  %175 = sbr.rel (%p172_p3) target bundleno = 355 (0x163), region = 32 }
   0xa   : > { %p208_p6 = scmp.lt.s32.totalorder (!%p172_p3), %s838_s19, 47  ;;  %p226_p7 = scmp.eq.s32.totalorder (!%p172_p3), %s1146_s12, 0 }
  0x10   : > { %s207_s20 = scalar_select %p206_p5, %s1146_s12, 1 }
  0x11   : > { %s1384_s19 = smov (!%p208_p6, %s838_s19), 47  ;;  %231 = sbr.rel (!%p226_p7) target bundleno = 27 (0x1b), region = 36 }
  0x12   : > { %s1082_s21 = smul.u32 144, %s207_s20  ;;  %s841_s23 = sshll.u32 %s1384_s19, 3  ;;  %v1164_v0 = vmov (%p226_p7), 0.0  }
  0x13   : > { %s1081_s22 = smul.u32 3, %s1384_s19  ;;  %s1223_s26 = scalar_lea.vmem %s1372_s3, %s841_s23  ;;  %232 = vst [vmem:[#allocation2] sm:$0xff] (%p226_p7), %v1164_v0  ;;  %233 = vst [vmem:[#allocation2 + $0x8] sm:$0xff] (%p226_p7), %v1164_v0 }
  0x14   : > { %234 = vst [vmem:[#allocation2 + $0x10] sm:$0xff] (%p226_p7), %v1164_v0  ;;  %235 = vst [vmem:[#allocation2 + $0x18] sm:$0xff] (%p226_p7), %v1164_v0 }
  0x15   : > { %s215_s27 = sadd.s32 %s1082_s21, %s1081_s22  ;;  %236 = vst [vmem:[#allocation2 + $0x20] sm:$0xff] (%p226_p7), %v1164_v0  ;;  %237 = vst [vmem:[#allocation2 + $0x28] sm:$0xff] (%p226_p7), %v1164_v0 }
  0x16   : > { %s839_s28 = sshll.u32 %s215_s27, 3  ;;  %238 = vst [vmem:[#allocation2 + $0x30] sm:$0xff] (%p226_p7), %v1164_v0  ;;  %239 = vst [vmem:[#allocation2 + $0x38] sm:$0xff] (%p226_p7), %v1164_v0 }
  0x17   : > { %s1228_s4 = scalar_lea.vmem %s1369_s0, %s839_s28  ;;  %240 = vst [vmem:[#allocation2 + $0x40] sm:$0xff] (%p226_p7), %v1164_v0  ;;  %241 = vst [vmem:[#allocation2 + $0x48] sm:$0xff] (%p226_p7), %v1164_v0 }
  0x18   : > { %242 = vst [vmem:[#allocation2 + $0x50] sm:$0xff] %v1164_v0  ;;  %243 = vst [vmem:[#allocation2 + $0x58] sm:$0xff] %v1164_v0 }
  0x19   : > { %244 = vst [vmem:[#allocation2 + $0x60] sm:$0xff] %v1164_v0  ;;  %245 = vst [vmem:[#allocation2 + $0x68] sm:$0xff] %v1164_v0 }
  0x1a   : > { %246 = vst [vmem:[#allocation2 + $0x70] sm:$0xff] %v1164_v0  ;;  %247 = vst [vmem:[#allocation2 + $0x78] sm:$0xff] %v1164_v0 }
  0x1b PF: > { %s248_s5 = smul.u32 384, %s1146_s12  ;;  %v317_v1 = vld [vmem:[%s1228_s4 + $0x8] sm:$0xff]  ;;  %v318_v2 = vld [vmem:[%s1228_s4 + $0x10] sm:$0xff]  ;;  %p686_p8 = scmp.eq.s32.totalorder %s1146_s12, 1 }
  0x1c   : > { %428 = vmatprep.mubr.f32.mxu0 %v317_v1  ;;  %993 = vmatprep.mubr.f32.mxu1 %v318_v2 }
  0x1d   : > { %s1236_s8 = scalar_lea.vmem %s1370_s1, %s248_s5 }
  0x1e   : > { %v268_v3 = vld [vmem:[%s1236_s8 + $0x80] sm:$0xff]  ;;  %v269_v4 = vld [vmem:[%s1236_s8 + $0x88] sm:$0xff]  ;;  %v270_v12 = vld [vmem:[%s1236_s8 + $0x90] sm:$0xff] }
  0x1f   : > { %v252_v5 = vld [vmem:[%s1236_s8] sm:$0xff]  ;;  %v1017_v6 = vpack.c.bf16 %v269_v4, %v268_v3  ;;  %v253_v7 = vld [vmem:[%s1236_s8 + $0x8] sm:$0xff]  ;;  %v271_v13 = vld [vmem:[%s1236_s8 + $0x98] sm:$0xff] }
  0x20   : > { %v284_v8 = vld [vmem:[%s1236_s8 + $0x100] sm:$0xff]  ;;  %v285_v9 = vld [vmem:[%s1236_s8 + $0x108] sm:$0xff]  ;;  %v1019_v10 = vpack.c.bf16 %v253_v7, %v252_v5  ;;  %v254_v14 = vld [vmem:[%s1236_s8 + $0x10] sm:$0xff]  ;;  %v1021_v15 = vpack.c.bf16 %v271_v13, %v270_v12 }
  0x21   : > { %v1049_v11 = vpack.c.bf16 %v285_v9, %v284_v8  ;;  %1018 = vmatprep.subr.bf16.mxu0 %v1017_v6  ;;  %v255_v16 = vld [vmem:[%s1236_s8 + $0x18] sm:$0xff]  ;;  %v286_v17 = vld [vmem:[%s1236_s8 + $0x110] sm:$0xff]  ;;  %v272_v21 = vld [vmem:[%s1236_s8 + $0xa0] sm:$0xff] }
  0x22   : > { %v287_v18 = vld [vmem:[%s1236_s8 + $0x118] sm:$0xff]  ;;  %1020 = vmatpush3.bf16.msra.mxu0 %v1019_v10  ;;  %v1023_v19 = vpack.c.bf16 %v255_v16, %v254_v14  ;;  %v273_v22 = vld [vmem:[%s1236_s8 + $0xa8] sm:$0xff]  ;;  %v256_v23 = vld [vmem:[%s1236_s8 + $0x20] sm:$0xff] }
  0x23   : > { %1050 = vmatprep.subr.bf16.mxu1 %v1049_v11  ;;  %v1053_v20 = vpack.c.bf16 %v287_v18, %v286_v17  ;;  %1022 = vmatprep.subr.bf16.mxu0 %v1021_v15  ;;  %v1025_v24 = vpack.c.bf16 %v273_v22, %v272_v21  ;;  %v257_v25 = vld [vmem:[%s1236_s8 + $0x28] sm:$0xff]  ;;  %v288_v26 = vld [vmem:[%s1236_s8 + $0x120] sm:$0xff]  ;;  %v274_v29 = vld [vmem:[%s1236_s8 + $0xb0] sm:$0xff] }
  0x24   : > { %1052 = vmatpush3.bf16.msra.mxu1 %v1049_v11  ;;  %v289_v27 = vld [vmem:[%s1236_s8 + $0x128] sm:$0xff]  ;;  %v275_v30 = vld [vmem:[%s1236_s8 + $0xb8] sm:$0xff]  ;;  %v290_v31 = vld [vmem:[%s1236_s8 + $0x130] sm:$0xff]  ;;  %v1027_v33 = vpack.c.bf16 %v257_v25, %v256_v23 }
  0x25   : > { %1054 = vmatprep.subr.bf16.mxu1 %v1053_v20  ;;  %v1057_v28 = vpack.c.bf16 %v289_v27, %v288_v26  ;;  %v291_v32 = vld [vmem:[%s1236_s8 + $0x138] sm:$0xff]  ;;  %v1029_v34 = vpack.c.bf16 %v275_v30, %v274_v29  ;;  %v258_v35 = vld [vmem:[%s1236_s8 + $0x30] sm:$0xff]  ;;  %v276_v38 = vld [vmem:[%s1236_s8 + $0xc0] sm:$0xff] }
  0x26   : > { %1024 = vmatpush3.bf16.msra.mxu0 %v1023_v19  ;;  %v259_v36 = vld [vmem:[%s1236_s8 + $0x38] sm:$0xff]  ;;  %v1061_v37 = vpack.c.bf16 %v291_v32, %v290_v31  ;;  %v277_v39 = vld [vmem:[%s1236_s8 + $0xc8] sm:$0xff]  ;;  %v292_v40 = vld [vmem:[%s1236_s8 + $0x140] sm:$0xff] }
  0x27   : > { %1026 = vmatprep.subr.bf16.mxu0 %v1025_v24  ;;  %v293_v41 = vld [vmem:[%s1236_s8 + $0x148] sm:$0xff]  ;;  %v1031_v42 = vpack.c.bf16 %v259_v36, %v258_v35  ;;  %v1033_v43 = vpack.c.bf16 %v277_v39, %v276_v38  ;;  %v260_v44 = vld [vmem:[%s1236_s8 + $0x40] sm:$0xff]  ;;  %v278_v47 = vld [vmem:[%s1236_s8 + $0xd0] sm:$0xff] }
  0x28   : > { %1056 = vmatpush3.bf16.msra.mxu1 %v1053_v20  ;;  %v261_v45 = vld [vmem:[%s1236_s8 + $0x48] sm:$0xff]  ;;  %v1065_v46 = vpack.c.bf16 %v293_v41, %v292_v40  ;;  %v279_v48 = vld [vmem:[%s1236_s8 + $0xd8] sm:$0xff]  ;;  %v294_v49 = vld [vmem:[%s1236_s8 + $0x150] sm:$0xff] }
  0x29   : > { %1058 = vmatprep.subr.bf16.mxu1 %v1057_v28  ;;  %v295_v50 = vld [vmem:[%s1236_s8 + $0x158] sm:$0xff]  ;;  %v1035_v51 = vpack.c.bf16 %v261_v45, %v260_v44  ;;  %v1037_v52 = vpack.c.bf16 %v279_v48, %v278_v47  ;;  %v262_v53 = vld [vmem:[%s1236_s8 + $0x50] sm:$0xff]  ;;  %v280_v56 = vld [vmem:[%s1236_s8 + $0xe0] sm:$0xff] }
  0x2a   : > { %1028 = vmatpush3.bf16.msra.mxu0 %v1027_v33  ;;  %v263_v54 = vld [vmem:[%s1236_s8 + $0x58] sm:$0xff]  ;;  %v1069_v55 = vpack.c.bf16 %v295_v50, %v294_v49  ;;  %v281_v57 = vld [vmem:[%s1236_s8 + $0xe8] sm:$0xff]  ;;  %v296_v58 = vld [vmem:[%s1236_s8 + $0x160] sm:$0xff] }
  0x2b   : > { %1030 = vmatprep.subr.bf16.mxu0 %v1029_v34  ;;  %v297_v59 = vld [vmem:[%s1236_s8 + $0x168] sm:$0xff]  ;;  %v1039_v60 = vpack.c.bf16 %v263_v54, %v262_v53  ;;  %v1041_v61 = vpack.c.bf16 %v281_v57, %v280_v56  ;;  %v264_v62 = vld [vmem:[%s1236_s8 + $0x60] sm:$0xff]  ;;  %v282_v1 = vld [vmem:[%s1236_s8 + $0xf0] sm:$0xff] }
  0x2c   : > { %1060 = vmatpush3.bf16.msra.mxu1 %v1057_v28  ;;  %v265_v63 = vld [vmem:[%s1236_s8 + $0x68] sm:$0xff]  ;;  %v1073_v0 = vpack.c.bf16 %v297_v59, %v296_v58  ;;  %v283_v2 = vld [vmem:[%s1236_s8 + $0xf8] sm:$0xff]  ;;  %v298_v3 = vld [vmem:[%s1236_s8 + $0x170] sm:$0xff] }
  0x2d   : > { %1062 = vmatprep.subr.bf16.mxu1 %v1061_v37  ;;  %v299_v4 = vld [vmem:[%s1236_s8 + $0x178] sm:$0xff]  ;;  %v1043_v5 = vpack.c.bf16 %v265_v63, %v264_v62  ;;  %v1045_v6 = vpack.c.bf16 %v283_v2, %v282_v1  ;;  %v266_v7 = vld [vmem:[%s1236_s8 + $0x70] sm:$0xff]  ;;  %v316_v11 = vld [vmem:[%s1228_s4] sm:$0xff] }
  0x2e   : > { %1032 = vmatpush3.bf16.msra.mxu0 %v1031_v42  ;;  %v267_v8 = vld [vmem:[%s1236_s8 + $0x78] sm:$0xff]  ;;  %v1077_v9 = vpack.c.bf16 %v299_v4, %v298_v3  ;;  %v321_v12 = vld [vmem:[%s1228_s4 + $0x28] sm:$0xff]  ;;  %v320_v13 = vld [vmem:[%s1228_s4 + $0x20] sm:$0xff] }
  0x2f   : > { %1034 = vmatprep.subr.bf16.mxu0 %v1033_v43  ;;  %v1047_v10 = vpack.c.bf16 %v267_v8, %v266_v7  ;;  %v324_v14 = vld [vmem:[%s1228_s4 + $0x40] sm:$0xff]  ;;  %v319_v15 = vld [vmem:[%s1228_s4 + $0x18] sm:$0xff]  ;;  %v330_v18 = vld [vmem:[%s1228_s4 + $0x70] sm:$0xff] }
  0x30   : > { %1064 = vmatpush3.bf16.msra.mxu1 %v1061_v37  ;;  %v323_v16 = vld [vmem:[%s1228_s4 + $0x38] sm:$0xff]  ;;  %v322_v19 = vld [vmem:[%s1228_s4 + $0x30] sm:$0xff]  ;;  %v333_v21 = vld [vmem:[%s1228_s4 + $0x88] sm:$0xff] }
  0x31   : > { %1066 = vmatprep.subr.bf16.mxu1 %v1065_v46  ;;  %v327_v17 = vld [vmem:[%s1228_s4 + $0x58] sm:$0xff]  ;;  %v326_v20 = vld [vmem:[%s1228_s4 + $0x50] sm:$0xff]  ;;  %v336_v22 = vld [vmem:[%s1228_s4 + $0xa0] sm:$0xff] }
  0x32   : > { %1036 = vmatpush3.bf16.msra.mxu0 %v1035_v51  ;;  %v325_v23 = vld [vmem:[%s1228_s4 + $0x48] sm:$0xff]  ;;  %v339_v25 = vld [vmem:[%s1228_s4 + $0xb8] sm:$0xff]  ;;  %v342_v26 = vld [vmem:[%s1228_s4 + $0xd0] sm:$0xff] }
  0x33   : > { %1038 = vmatprep.subr.bf16.mxu0 %v1037_v52  ;;  %v329_v24 = vld [vmem:[%s1228_s4 + $0x68] sm:$0xff]  ;;  %v328_v27 = vld [vmem:[%s1228_s4 + $0x60] sm:$0xff]  ;;  %v331_v31 = vld [vmem:[%s1228_s4 + $0x78] sm:$0xff] }
  0x34   : > { %1068 = vmatpush3.bf16.msra.mxu1 %v1065_v46  ;;  %v332_v28 = vld [vmem:[%s1228_s4 + $0x80] sm:$0xff]  ;;  %v345_v29 = vld [vmem:[%s1228_s4 + $0xe8] sm:$0xff]  ;;  %v335_v32 = vld [vmem:[%s1228_s4 + $0x98] sm:$0xff] }
  0x35   : > { %1070 = vmatprep.subr.bf16.mxu1 %v1069_v55  ;;  %v348_v30 = vld [vmem:[%s1228_s4 + $0x100] sm:$0xff]  ;;  %v351_v33 = vld [vmem:[%s1228_s4 + $0x118] sm:$0xff]  ;;  %v354_v34 = vld [vmem:[%s1228_s4 + $0x130] sm:$0xff] }
  0x36   : > { %1040 = vmatpush3.bf16.msra.mxu0 %v1039_v60  ;;  %v334_v35 = vld [vmem:[%s1228_s4 + $0x90] sm:$0xff]  ;;  %v357_v37 = vld [vmem:[%s1228_s4 + $0x148] sm:$0xff]  ;;  %v360_v38 = vld [vmem:[%s1228_s4 + $0x160] sm:$0xff] }
  0x37   : > { %1042 = vmatprep.subr.bf16.mxu0 %v1041_v61  ;;  %v338_v36 = vld [vmem:[%s1228_s4 + $0xb0] sm:$0xff]  ;;  %v337_v39 = vld [vmem:[%s1228_s4 + $0xa8] sm:$0xff]  ;;  %v363_v41 = vld [vmem:[%s1228_s4 + $0x178] sm:$0xff] }
  0x38   : > { %1072 = vmatpush3.bf16.msra.mxu1 %v1069_v55  ;;  %v341_v40 = vld [vmem:[%s1228_s4 + $0xc8] sm:$0xff]  ;;  %v340_v42 = vld [vmem:[%s1228_s4 + $0xc0] sm:$0xff]  ;;  %v343_v44 = vld [vmem:[%s1228_s4 + $0xd8] sm:$0xff] }
  0x39   : > { %1074 = vmatprep.subr.bf16.mxu1 %v1073_v0  ;;  %v344_v43 = vld [vmem:[%s1228_s4 + $0xe0] sm:$0xff]  ;;  %v347_v45 = vld [vmem:[%s1228_s4 + $0xf8] sm:$0xff]  ;;  %v346_v46 = vld [vmem:[%s1228_s4 + $0xf0] sm:$0xff] }
  0x3a   : > { %1044 = vmatpush3.bf16.msra.mxu0 %v1043_v5  ;;  %v350_v47 = vld [vmem:[%s1228_s4 + $0x110] sm:$0xff]  ;;  %v349_v48 = vld [vmem:[%s1228_s4 + $0x108] sm:$0xff]  ;;  %v352_v50 = vld [vmem:[%s1228_s4 + $0x120] sm:$0xff] }
  0x3b   : > { %1046 = vmatprep.subr.bf16.mxu0 %v1045_v6  ;;  %v353_v49 = vld [vmem:[%s1228_s4 + $0x128] sm:$0xff]  ;;  %v356_v51 = vld [vmem:[%s1228_s4 + $0x140] sm:$0xff]  ;;  %v355_v52 = vld [vmem:[%s1228_s4 + $0x138] sm:$0xff] }
  0x3c   : > { %1076 = vmatpush3.bf16.msra.mxu1 %v1073_v0  ;;  %v359_v53 = vld [vmem:[%s1228_s4 + $0x158] sm:$0xff]  ;;  %v358_v54 = vld [vmem:[%s1228_s4 + $0x150] sm:$0xff]  ;;  %v361_v56 = vld [vmem:[%s1228_s4 + $0x168] sm:$0xff] }
  0x3d   : > { %1078 = vmatprep.subr.bf16.mxu1 %v1077_v9  ;;  %v362_v55 = vld [vmem:[%s1228_s4 + $0x170] sm:$0xff]  ;;  %v300_v62 = vld [vmem:[#allocation2] sm:$0xff]  ;;  %v301_v6 = vld [vmem:[#allocation2 + $0x8] sm:$0xff] }
  0x3e   : > { %1048 = vmatpush3.bf16.msra.mxu0 %v1047_v10 }
  0x40   : > { %1080 = vmatpush3.bf16.msra.mxu1 %v1077_v9 }
  0x41   : > { %429 = vmatmul.mubr.f32.vlgmr.msra.gmra.mrb[0].mxu0 %v316_v11 }
  0x42   : > { %433 = vmatprep.mubr.f32.mxu0 %v320_v13 }
  0x43   : > { %994 = vmatmul.mubr.f32.vlgmr.msra.gmra.mrb[0].mxu1 %v321_v12 }
  0x44   : > { %996 = vmatprep.mubr.f32.mxu1 %v324_v14  ;;  %v302_v14 = vld [vmem:[#allocation2 + $0x10] sm:$0xff] }
  0x45   : > { %434 = vmatmul.mubr.f32.gmra.mrb[2].mxu0 %v319_v15 }
  0x46   : > { %438 = vmatprep.mubr.f32.mxu0 %v323_v16 }
  0x47   : > { %997 = vmatmul.mubr.f32.gmra.mrb[2].mxu1 %v327_v17 }
  0x48   : > { %999 = vmatprep.mubr.f32.mxu1 %v330_v18 }
  0x49   : > { %439 = vmatmul.mubr.f32.gmra.mrb[4].mxu0 %v322_v19 }
  0x4a   : > { %443 = vmatprep.mubr.f32.mxu0 %v326_v20 }
  0x4b   : > { %1000 = vmatmul.mubr.f32.gmra.mrb[4].mxu1 %v333_v21 }
  0x4c   : > { %1002 = vmatprep.mubr.f32.mxu1 %v336_v22  ;;  %v303_v22 = vld [vmem:[#allocation2 + $0x18] sm:$0xff] }
  0x4d   : > { %444 = vmatmul.mubr.f32.gmra.mrb[6].mxu0 %v325_v23 }
  0x4e   : > { %448 = vmatprep.mubr.f32.mxu0 %v329_v24 }
  0x4f   : > { %1003 = vmatmul.mubr.f32.gmra.mrb[6].mxu1 %v339_v25 }
  0x50   : > { %1005 = vmatprep.mubr.f32.mxu1 %v342_v26 }
  0x51   : > { %449 = vmatmul.mubr.f32.gmra.mrb[8].mxu0 %v328_v27 }
  0x52   : > { %453 = vmatprep.mubr.f32.mxu0 %v332_v28 }
  0x53   : > { %1006 = vmatmul.mubr.f32.gmra.mrb[8].mxu1 %v345_v29 }
  0x54   : > { %1008 = vmatprep.mubr.f32.mxu1 %v348_v30  ;;  %v304_v30 = vld [vmem:[#allocation2 + $0x20] sm:$0xff] }
  0x55   : > { %454 = vmatmul.mubr.f32.gmra.mrb[10].mxu0 %v331_v31 }
  0x56   : > { %458 = vmatprep.mubr.f32.mxu0 %v335_v32 }
  0x57   : > { %1009 = vmatmul.mubr.f32.gmra.mrb[10].mxu1 %v351_v33 }
  0x58   : > { %1011 = vmatprep.mubr.f32.mxu1 %v354_v34 }
  0x59   : > { %459 = vmatmul.mubr.f32.gmra.mrb[12].mxu0 %v334_v35 }
  0x5a   : > { %463 = vmatprep.mubr.f32.mxu0 %v338_v36 }
  0x5b   : > { %1012 = vmatmul.mubr.f32.gmra.mrb[12].mxu1 %v357_v37 }
  0x5c   : > { %1014 = vmatprep.mubr.f32.mxu1 %v360_v38  ;;  %v305_v38 = vld [vmem:[#allocation2 + $0x28] sm:$0xff] }
  0x5d   : > { %464 = vmatmul.mubr.f32.gmra.mrb[14].mxu0 %v337_v39 }
  0x5e   : > { %468 = vmatprep.mubr.f32.mxu0 %v341_v40 }
  0x5f   : > { %1015 = vmatmul.mubr.f32.gmra.mrb[14].mxu1 %v363_v41 }
  0x61   : > { %469 = vmatmul.mubr.f32.gmra.mrb[16].mxu0 %v340_v42 }
  0x62   : > { %473 = vmatprep.mubr.f32.mxu0 %v344_v43 }
  0x65   : > { %474 = vmatmul.mubr.f32.gmra.mrb[18].mxu0 %v343_v44 }
  0x66   : > { %478 = vmatprep.mubr.f32.mxu0 %v347_v45 }
  0x69   : > { %479 = vmatmul.mubr.f32.gmra.mrb[20].mxu0 %v346_v46  ;;  %v306_v46 = vld [vmem:[#allocation2 + $0x30] sm:$0xff] }
  0x6a   : > { %483 = vmatprep.mubr.f32.mxu0 %v350_v47 }
  0x6d   : > { %484 = vmatmul.mubr.f32.gmra.mrb[22].mxu0 %v349_v48 }
  0x6e   : > { %488 = vmatprep.mubr.f32.mxu0 %v353_v49 }
  0x71   : > { %489 = vmatmul.mubr.f32.gmra.mrb[24].mxu0 %v352_v50 }
  0x72   : > { %493 = vmatprep.mubr.f32.mxu0 %v356_v51 }
  0x75   : > { %494 = vmatmul.mubr.f32.gmra.mrb[26].mxu0 %v355_v52 }
  0x76   : > { %498 = vmatprep.mubr.f32.mxu0 %v359_v53 }
  0x79   : > { %499 = vmatmul.mubr.f32.gmra.mrb[28].mxu0 %v358_v54  ;;  %v307_v54 = vld [vmem:[#allocation2 + $0x38] sm:$0xff] }
  0x7a   : > { %503 = vmatprep.mubr.f32.mxu0 %v362_v55 }
  0x7d   : > { %504 = vmatmul.mubr.f32.gmra.mrb[30].mxu0 %v361_v56 }
 0x114   : > { %v881_v57 = vpop.f32.mrb[0].mxu0 }
 0x115   : > { %v882_v58 = vpop.f32.mrb[1].mxu0 }
 0x116   : > { %v995_v59 = vpop.f32.mrb[0].mxu1  ;;  %v883_v60 = vadd.f32 %v882_v58, %v881_v57 }
 0x117   : > { %v575_v61 = vpop.f32.mrb[1].mxu1 }
 0x118   : > { %v576_v63 = vadd.f32 %v883_v60, %v575_v61  ;;  %v884_v0 = vpop.f32.mrb[2].mxu0  ;;  %v308_v60 = vld [vmem:[#allocation2 + $0x40] sm:$0xff] }
 0x119   : > { %v885_v1 = vpop.f32.mrb[3].mxu0 }
 0x11a   : > { %v998_v2 = vpop.f32.mrb[2].mxu1  ;;  %v654_v3 = vadd.f32 %v576_v63, %v300_v62  ;;  %v886_v4 = vadd.f32 %v885_v1, %v884_v0 }
 0x11b   : > { %v585_v5 = vpop.f32.mrb[3].mxu1 }
 0x11c   : > { %670 = vst [vmem:[#allocation2] sm:$0xff] %v654_v3  ;;  %v581_v7 = vadd.f32 %v995_v59, %v886_v4  ;;  %v887_v8 = vpop.f32.mrb[4].mxu0 }
 0x11d   : > { %v888_v9 = vpop.f32.mrb[5].mxu0 }
 0x11e   : > { %v1001_v10 = vpop.f32.mrb[4].mxu1  ;;  %v655_v11 = vadd.f32 %v581_v7, %v301_v6  ;;  %v889_v12 = vadd.f32 %v888_v9, %v887_v8  ;;  %v310_v8 = vld [vmem:[#allocation2 + $0x50] sm:$0xff] }
 0x11f   : > { %v595_v13 = vpop.f32.mrb[5].mxu1 }
 0x120   : > { %671 = vst [vmem:[#allocation2 + $0x8] sm:$0xff] %v655_v11  ;;  %v586_v15 = vadd.f32 %v889_v12, %v585_v5  ;;  %v890_v16 = vpop.f32.mrb[6].mxu0 }
 0x121   : > { %v891_v17 = vpop.f32.mrb[7].mxu0 }
 0x122   : > { %v1004_v18 = vpop.f32.mrb[6].mxu1  ;;  %v656_v19 = vadd.f32 %v586_v15, %v302_v14  ;;  %v892_v20 = vadd.f32 %v891_v17, %v890_v16  ;;  %v311_v14 = vld [vmem:[#allocation2 + $0x58] sm:$0xff] }
 0x123   : > { %v605_v21 = vpop.f32.mrb[7].mxu1 }
 0x124   : > { %672 = vst [vmem:[#allocation2 + $0x10] sm:$0xff] %v656_v19  ;;  %v591_v23 = vadd.f32 %v998_v2, %v892_v20  ;;  %v893_v24 = vpop.f32.mrb[8].mxu0  ;;  %v309_v2 = vld [vmem:[#allocation2 + $0x48] sm:$0xff]  ;;  %v312_v20 = vld [vmem:[#allocation2 + $0x60] sm:$0xff] }
 0x125   : > { %v894_v25 = vpop.f32.mrb[9].mxu0 }
 0x126   : > { %v1007_v26 = vpop.f32.mrb[8].mxu1  ;;  %v657_v27 = vadd.f32 %v591_v23, %v303_v22  ;;  %v895_v28 = vadd.f32 %v894_v25, %v893_v24 }
 0x127   : > { %v615_v29 = vpop.f32.mrb[9].mxu1 }
 0x128   : > { %673 = vst [vmem:[#allocation2 + $0x18] sm:$0xff] %v657_v27  ;;  %v596_v31 = vadd.f32 %v895_v28, %v595_v13  ;;  %v896_v32 = vpop.f32.mrb[10].mxu0 }
 0x129   : > { %v897_v33 = vpop.f32.mrb[11].mxu0 }
 0x12a   : > { %v1010_v34 = vpop.f32.mrb[10].mxu1  ;;  %v658_v35 = vadd.f32 %v596_v31, %v304_v30  ;;  %v898_v36 = vadd.f32 %v897_v33, %v896_v32  ;;  %v314_v32 = vld [vmem:[#allocation2 + $0x70] sm:$0xff] }
 0x12b   : > { %v625_v37 = vpop.f32.mrb[11].mxu1 }
 0x12c   : > { %674 = vst [vmem:[#allocation2 + $0x20] sm:$0xff] %v658_v35  ;;  %v601_v39 = vadd.f32 %v1001_v10, %v898_v36  ;;  %v899_v40 = vpop.f32.mrb[12].mxu0 }
 0x12d   : > { %v900_v41 = vpop.f32.mrb[13].mxu0 }
 0x12e   : > { %v1013_v42 = vpop.f32.mrb[12].mxu1  ;;  %v659_v43 = vadd.f32 %v601_v39, %v305_v38  ;;  %v901_v44 = vadd.f32 %v900_v41, %v899_v40  ;;  %v315_v38 = vld [vmem:[#allocation2 + $0x78] sm:$0xff]  ;;  %v691_v41 = vld [vmem:[#allocation2] sm:$0xff] (%p686_p8) }
 0x12f   : > { %v635_v45 = vpop.f32.mrb[13].mxu1 }
 0x130   : > { %675 = vst [vmem:[#allocation2 + $0x28] sm:$0xff] %v659_v43  ;;  %v606_v47 = vadd.f32 %v901_v44, %v605_v21  ;;  %v902_v48 = vpop.f32.mrb[14].mxu0  ;;  %v692_v43 = vld [vmem:[#allocation2 + $0x8] sm:$0xff] (%p686_p8) }
 0x131   : > { %v903_v49 = vpop.f32.mrb[15].mxu0 }
 0x132   : > { %v1016_v50 = vpop.f32.mrb[14].mxu1  ;;  %v660_v51 = vadd.f32 %v606_v47, %v306_v46  ;;  %v904_v52 = vadd.f32 %v903_v49, %v902_v48  ;;  %v693_v46 = vld [vmem:[#allocation2 + $0x10] sm:$0xff] (%p686_p8)  ;;  %v694_v47 = vld [vmem:[#allocation2 + $0x18] sm:$0xff] (%p686_p8) }
 0x133   : > { %v645_v53 = vpop.f32.mrb[15].mxu1  ;;  %v695_v48 = vld [vmem:[#allocation2 + $0x20] sm:$0xff] (%p686_p8) }
 0x134   : > { %676 = vst [vmem:[#allocation2 + $0x30] sm:$0xff] %v660_v51  ;;  %v611_v55 = vadd.f32 %v1004_v18, %v904_v52  ;;  %v905_v56 = vpop.f32.mrb[16].mxu0 }
 0x135   : > { %v906_v57 = vpop.f32.mrb[17].mxu0 }
 0x136   : > { %v661_v58 = vadd.f32 %v611_v55, %v307_v54  ;;  %v907_v59 = vadd.f32 %v906_v57, %v905_v56 }
 0x137   : > { %v696_v52 = vld [vmem:[#allocation2 + $0x28] sm:$0xff] (%p686_p8) }
 0x138   : > { %677 = vst [vmem:[#allocation2 + $0x38] sm:$0xff] %v661_v58  ;;  %v616_v61 = vadd.f32 %v907_v59, %v615_v29  ;;  %v908_v62 = vpop.f32.mrb[18].mxu0 }
 0x139   : > { %v909_v63 = vpop.f32.mrb[19].mxu0 }
 0x13a   : > { %v662_v0 = vadd.f32 %v616_v61, %v308_v60  ;;  %v910_v1 = vadd.f32 %v909_v63, %v908_v62 }
 0x13c   : > { %678 = vst [vmem:[#allocation2 + $0x40] sm:$0xff] %v662_v0  ;;  %v621_v3 = vadd.f32 %v1007_v26, %v910_v1  ;;  %v911_v4 = vpop.f32.mrb[20].mxu0  ;;  %v313_v26 = vld [vmem:[#allocation2 + $0x68] sm:$0xff] }
 0x13d   : > { %v912_v5 = vpop.f32.mrb[21].mxu0 }
 0x13e   : > { %v663_v6 = vadd.f32 %v621_v3, %v309_v2  ;;  %v913_v7 = vadd.f32 %v912_v5, %v911_v4 }
 0x13f   : > { %v698_v54 = vld [vmem:[#allocation2 + $0x38] sm:$0xff] (%p686_p8) }
 0x140   : > { %679 = vst [vmem:[#allocation2 + $0x48] sm:$0xff] %v663_v6  ;;  %v626_v9 = vadd.f32 %v913_v7, %v625_v37  ;;  %v914_v10 = vpop.f32.mrb[22].mxu0 }
 0x141   : > { %v915_v11 = vpop.f32.mrb[23].mxu0 }
 0x142   : > { %v664_v12 = vadd.f32 %v626_v9, %v310_v8  ;;  %v916_v13 = vadd.f32 %v915_v11, %v914_v10 }
 0x143   : > { %v699_v58 = vld [vmem:[#allocation2 + $0x40] sm:$0xff] (%p686_p8) }
 0x144   : > { %680 = vst [vmem:[#allocation2 + $0x50] sm:$0xff] %v664_v12  ;;  %v631_v15 = vadd.f32 %v1010_v34, %v916_v13  ;;  %v917_v16 = vpop.f32.mrb[24].mxu0 }
 0x145   : > { %v918_v17 = vpop.f32.mrb[25].mxu0 }
 0x146   : > { %v665_v18 = vadd.f32 %v631_v15, %v311_v14  ;;  %v919_v19 = vadd.f32 %v918_v17, %v917_v16 }
 0x147   : > { %v700_v59 = vld [vmem:[#allocation2 + $0x48] sm:$0xff] (%p686_p8) }
 0x148   : > { %681 = vst [vmem:[#allocation2 + $0x58] sm:$0xff] %v665_v18  ;;  %v636_v21 = vadd.f32 %v919_v19, %v635_v45  ;;  %v920_v22 = vpop.f32.mrb[26].mxu0 }
 0x149   : > { %v921_v23 = vpop.f32.mrb[27].mxu0 }
 0x14a   : > { %v666_v24 = vadd.f32 %v636_v21, %v312_v20  ;;  %v922_v25 = vadd.f32 %v921_v23, %v920_v22 }
 0x14b   : > { %v701_v60 = vld [vmem:[#allocation2 + $0x50] sm:$0xff] (%p686_p8) }
 0x14c   : > { %682 = vst [vmem:[#allocation2 + $0x60] sm:$0xff] %v666_v24  ;;  %v641_v27 = vadd.f32 %v1013_v42, %v922_v25  ;;  %v923_v28 = vpop.f32.mrb[28].mxu0  ;;  %v844_v42 = vld [vmem:[%s1371_s2] ss:$0 sm:$0xff] (%p686_p8) }
 0x14d   : > { %v924_v29 = vpop.f32.mrb[29].mxu0  ;;  %v714_v44 = vadd.f32 (%p686_p8), %v844_v42, %v691_v41  ;;  %v715_v45 = vadd.f32 (%p686_p8), %v844_v42, %v692_v43  ;;  %v716_v49 = vadd.f32 (%p686_p8), %v844_v42, %v693_v46  ;;  %v718_v51 = vadd.f32 (%p686_p8), %v844_v42, %v695_v48 }
 0x14e   : > { %v667_v30 = vadd.f32 %v641_v27, %v313_v26  ;;  %v925_v31 = vadd.f32 %v924_v29, %v923_v28  ;;  %v719_v55 = vadd.f32 (%p686_p8), %v844_v42, %v696_v52  ;;  %v721_v57 = vadd.f32 (%p686_p8), %v844_v42, %v698_v54 }
 0x14f   : > { %730 = vst [vmem:[%s1223_s26] sm:$0xff] (%p686_p8), %v714_v44  ;;  %731 = vst [vmem:[%s1223_s26 + $0x8] sm:$0xff] (%p686_p8), %v715_v45  ;;  %v722_v61 = vadd.f32 (%p686_p8), %v844_v42, %v699_v58  ;;  %v723_v62 = vadd.f32 (%p686_p8), %v844_v42, %v700_v59  ;;  %v724_v63 = vadd.f32 (%p686_p8), %v844_v42, %v701_v60  ;;  %v702_v0 = vld [vmem:[#allocation2 + $0x58] sm:$0xff] (%p686_p8) }
 0x150   : > { %683 = vst [vmem:[#allocation2 + $0x68] sm:$0xff] %v667_v30  ;;  %v646_v33 = vadd.f32 %v925_v31, %v645_v53  ;;  %v926_v34 = vpop.f32.mrb[30].mxu0  ;;  %v697_v53 = vld [vmem:[#allocation2 + $0x30] sm:$0xff] (%p686_p8)  ;;  %732 = vst [vmem:[%s1223_s26 + $0x10] sm:$0xff] (%p686_p8), %v716_v49  ;;  %v725_v3 = vadd.f32 (%p686_p8), %v844_v42, %v702_v0 }
 0x151   : > { %v927_v35 = vpop.f32.mrb[31].mxu0  ;;  %v720_v56 = vadd.f32 (%p686_p8), %v844_v42, %v697_v53  ;;  %734 = vst [vmem:[%s1223_s26 + $0x20] sm:$0xff] (%p686_p8), %v718_v51  ;;  %735 = vst [vmem:[%s1223_s26 + $0x28] sm:$0xff] (%p686_p8), %v719_v55 }
 0x152   : > { %v668_v36 = vadd.f32 %v646_v33, %v314_v32  ;;  %v928_v37 = vadd.f32 %v927_v35, %v926_v34  ;;  %690 = sbr.rel (!%p686_p8) target bundleno = 355 (0x163), region = 40  ;;  %737 = vst [vmem:[%s1223_s26 + $0x38] sm:$0xff] (%p686_p8), %v721_v57  ;;  %738 = vst [vmem:[%s1223_s26 + $0x40] sm:$0xff] (%p686_p8), %v722_v61 }
 0x153   : > { %v703_v1 = vld [vmem:[#allocation2 + $0x60] sm:$0xff] (%p686_p8)  ;;  %736 = vst [vmem:[%s1223_s26 + $0x30] sm:$0xff] (%p686_p8), %v720_v56  ;;  %739 = vst [vmem:[%s1223_s26 + $0x48] sm:$0xff] (%p686_p8), %v723_v62 }
 0x154   : > { %684 = vst [vmem:[#allocation2 + $0x70] sm:$0xff] %v668_v36  ;;  %v651_v39 = vadd.f32 %v1016_v50, %v928_v37  ;;  %v717_v50 = vadd.f32 (%p686_p8), %v844_v42, %v694_v47  ;;  %v726_v4 = vadd.f32 (%p686_p8), %v844_v42, %v703_v1  ;;  %740 = vst [vmem:[%s1223_s26 + $0x50] sm:$0xff] (%p686_p8), %v724_v63 }
 0x155   : > { %741 = vst [vmem:[%s1223_s26 + $0x58] sm:$0xff] (%p686_p8), %v725_v3 }
 0x156   : > { %v669_v40 = vadd.f32 %v651_v39, %v315_v38  ;;  %733 = vst [vmem:[%s1223_s26 + $0x18] sm:$0xff] (%p686_p8), %v717_v50  ;;  %742 = vst [vmem:[%s1223_s26 + $0x60] sm:$0xff] (%p686_p8), %v726_v4 }
 0x157   : > { %v704_v2 = vld [vmem:[#allocation2 + $0x68] sm:$0xff] (%p686_p8) }
 0x158   : > { %685 = vst [vmem:[#allocation2 + $0x78] sm:$0xff] %v669_v40  ;;  %v727_v5 = vadd.f32 (%p686_p8), %v844_v42, %v704_v2 }
 0x15a   : > { %743 = vst [vmem:[%s1223_s26 + $0x68] sm:$0xff] %v727_v5 }
 0x15b   : > { %v705_v6 = vld [vmem:[#allocation2 + $0x70] sm:$0xff] }
 0x15c   : > { %v728_v8 = vadd.f32 %v844_v42, %v705_v6 }
 0x15e   : > { %744 = vst [vmem:[%s1223_s26 + $0x70] sm:$0xff] %v728_v8 }
 0x15f   : > { %v706_v7 = vld [vmem:[#allocation2 + $0x78] sm:$0xff] }
 0x160   : > { %v729_v9 = vadd.f32 %v844_v42, %v706_v7 }
 0x162   : > { %745 = vst [vmem:[%s1223_s26 + $0x78] sm:$0xff] %v729_v9 }
 0x163 PF: > { %s13_s16 = sadd.s32 1, %s1162_s16   ;;  %s1373_s12 = smov %s1154_s14 }
 0x164   : > { %p10_p9 = scmp.ge.s32.totalorder %s13_s16, 8   ;;  %s1374_s13 = smov %s1158_s15 }
 0x165   : > { %s1375_s14 = smov %s1378_s17  ;;  %s1376_s15 = smov %s1382_s18 }
 0x166   :  { %12 = sbr.rel (!%p10_p9) target bundleno = 3 (0x3), region = 71 }

// kernel: rel_graph_conv_two_layer.2
= control target key start
LH: loop header
LB: loop body
LE: loop exit
PB: predicated region body
PF: predicated region fallthrough
CT: control target
= control target key end

     0   :  { %s1145_s9 = smov 0   ;;  %s1147_s10 = smov 0   ;;  %s1326_s0 = inlined_call_operand.vmem [shape: f32[2,384,384], index: 0, kind: input, shape index: {}]   ;;  %s1327_s1 = inlined_call_operand.vmem [shape: f32[768,128], index: 1, kind: input, shape index: {}]   ;;  %s1328_s2 = inlined_call_operand.vmem [shape: f32[384,128], index: 2, kind: output, shape index: {}]  }
   0x1   :  { %s1149_s11 = smov 0   ;;  %s1151_s12 = smov 0  }
   0x2   :  { %s1153_s13 = smov 0  }
   0x3 LB: > { %s27_s14 = sadd.s32 1, %s1119_s11  ;;  %s31_s15 = sadd.s32 1, %s1123_s12  ;;  %s1127_s13 = sphi %s1153_s13, %s12_s13   ;;  %s1123_s12 = sphi %s1151_s12, %s1332_s12   ;;  %s1119_s11 = sphi %s1149_s11, %s1331_s11   ;;  %s1115_s10 = sphi %s1147_s10, %s1330_s10   ;;  %s1111_s9 = sphi %s1145_s9, %s1329_s9  }
   0x4   : > { %p29_p0 = scmp.ge.s32.totalorder %s27_s14, 2  ;;  %p803_p1 = scmp.ge.s32.totalorder %s1127_s13, 1 }
   0x5   : > { %p146_p2 = scmp.lt.s32.totalorder %s1127_s13, 7 }
   0x6   : > { %s1334_s14 = smov (%p29_p0, %s27_s14), 0  ;;  %s1336_s15 = smov (!%p29_p0, %s31_s15), %s1123_s12 }
   0x7   : > { %p147_p3 = pnand %p803_p1, %p146_p2  ;;  %p33_p4 = scmp.ge.s32.totalorder %s1336_s15, 3 }
   0x8   : > { %s804_s16 = sshll.u32 (!%p147_p3), %s1115_s10, 4  ;;  %p179_p5 = scmp.lt.s32.totalorder (!%p147_p3), %s1111_s9, 1 }
   0x9   : > { %s1338_s15 = smov (%p33_p4, %s1336_s15), 0  ;;  %150 = sbr.rel (%p147_p3) target bundleno = 355 (0x163), region = 28 }
   0xa   : > { %p181_p6 = scmp.lt.s32.totalorder (!%p147_p3), %s804_s16, 47  ;;  %p199_p7 = scmp.eq.s32.totalorder (!%p147_p3), %s1111_s9, 0 }
  0x10   : > { %s180_s17 = scalar_select %p179_p5, %s1111_s9, 1 }
  0x11   : > { %s1340_s16 = smov (!%p181_p6, %s804_s16), 47  ;;  %204 = sbr.rel (!%p199_p7) target bundleno = 27 (0x1b), region = 32 }
  0x12   : > { %s1047_s18 = smul.u32 144, %s180_s17  ;;  %s807_s20 = sshll.u32 %s1340_s16, 3  ;;  %v1129_v0 = vmov (%p199_p7), 0.0  }
  0x13   : > { %s1046_s19 = smul.u32 3, %s1340_s16  ;;  %s1183_s23 = scalar_lea.vmem %s1328_s2, %s807_s20  ;;  %205 = vst [vmem:[#allocation2] sm:$0xff] (%p199_p7), %v1129_v0  ;;  %206 = vst [vmem:[#allocation2 + $0x8] sm:$0xff] (%p199_p7), %v1129_v0 }
  0x14   : > { %207 = vst [vmem:[#allocation2 + $0x10] sm:$0xff] (%p199_p7), %v1129_v0  ;;  %208 = vst [vmem:[#allocation2 + $0x18] sm:$0xff] (%p199_p7), %v1129_v0 }
  0x15   : > { %s188_s24 = sadd.s32 %s1047_s18, %s1046_s19  ;;  %209 = vst [vmem:[#allocation2 + $0x20] sm:$0xff] (%p199_p7), %v1129_v0  ;;  %210 = vst [vmem:[#allocation2 + $0x28] sm:$0xff] (%p199_p7), %v1129_v0 }
  0x16   : > { %s805_s25 = sshll.u32 %s188_s24, 3  ;;  %211 = vst [vmem:[#allocation2 + $0x30] sm:$0xff] (%p199_p7), %v1129_v0  ;;  %212 = vst [vmem:[#allocation2 + $0x38] sm:$0xff] (%p199_p7), %v1129_v0 }
  0x17   : > { %s1188_s28 = scalar_lea.vmem %s1326_s0, %s805_s25  ;;  %213 = vst [vmem:[#allocation2 + $0x40] sm:$0xff] (%p199_p7), %v1129_v0  ;;  %214 = vst [vmem:[#allocation2 + $0x48] sm:$0xff] (%p199_p7), %v1129_v0 }
  0x18   : > { %215 = vst [vmem:[#allocation2 + $0x50] sm:$0xff] %v1129_v0  ;;  %216 = vst [vmem:[#allocation2 + $0x58] sm:$0xff] %v1129_v0 }
  0x19   : > { %217 = vst [vmem:[#allocation2 + $0x60] sm:$0xff] %v1129_v0  ;;  %218 = vst [vmem:[#allocation2 + $0x68] sm:$0xff] %v1129_v0 }
  0x1a   : > { %219 = vst [vmem:[#allocation2 + $0x70] sm:$0xff] %v1129_v0  ;;  %220 = vst [vmem:[#allocation2 + $0x78] sm:$0xff] %v1129_v0 }
  0x1b PF: > { %s221_s29 = smul.u32 384, %s1111_s9  ;;  %v290_v1 = vld [vmem:[%s1188_s28 + $0x8] sm:$0xff]  ;;  %v291_v2 = vld [vmem:[%s1188_s28 + $0x10] sm:$0xff]  ;;  %p659_p8 = scmp.eq.s32.totalorder %s1111_s9, 1 }
  0x1c   : > { %401 = vmatprep.mubr.f32.mxu0 %v290_v1  ;;  %958 = vmatprep.mubr.f32.mxu1 %v291_v2 }
  0x1d   : > { %s1196_s4 = scalar_lea.vmem %s1327_s1, %s221_s29 }
  0x1e   : > { %v241_v3 = vld [vmem:[%s1196_s4 + $0x80] sm:$0xff]  ;;  %v242_v4 = vld [vmem:[%s1196_s4 + $0x88] sm:$0xff]  ;;  %v243_v12 = vld [vmem:[%s1196_s4 + $0x90] sm:$0xff] }
  0x1f   : > { %v225_v5 = vld [vmem:[%s1196_s4] sm:$0xff]  ;;  %v982_v6 = vpack.c.bf16 %v242_v4, %v241_v3  ;;  %v226_v7 = vld [vmem:[%s1196_s4 + $0x8] sm:$0xff]  ;;  %v244_v13 = vld [vmem:[%s1196_s4 + $0x98] sm:$0xff] }
  0x20   : > { %v257_v8 = vld [vmem:[%s1196_s4 + $0x100] sm:$0xff]  ;;  %v258_v9 = vld [vmem:[%s1196_s4 + $0x108] sm:$0xff]  ;;  %v984_v10 = vpack.c.bf16 %v226_v7, %v225_v5  ;;  %v227_v14 = vld [vmem:[%s1196_s4 + $0x10] sm:$0xff]  ;;  %v986_v15 = vpack.c.bf16 %v244_v13, %v243_v12 }
  0x21   : > { %v1014_v11 = vpack.c.bf16 %v258_v9, %v257_v8  ;;  %983 = vmatprep.subr.bf16.mxu0 %v982_v6  ;;  %v228_v16 = vld [vmem:[%s1196_s4 + $0x18] sm:$0xff]  ;;  %v259_v17 = vld [vmem:[%s1196_s4 + $0x110] sm:$0xff]  ;;  %v245_v21 = vld [vmem:[%s1196_s4 + $0xa0] sm:$0xff] }
  0x22   : > { %v260_v18 = vld [vmem:[%s1196_s4 + $0x118] sm:$0xff]  ;;  %985 = vmatpush3.bf16.msra.mxu0 %v984_v10  ;;  %v988_v19 = vpack.c.bf16 %v228_v16, %v227_v14  ;;  %v246_v22 = vld [vmem:[%s1196_s4 + $0xa8] sm:$0xff]  ;;  %v229_v23 = vld [vmem:[%s1196_s4 + $0x20] sm:$0xff] }
  0x23   : > { %1015 = vmatprep.subr.bf16.mxu1 %v1014_v11  ;;  %v1018_v20 = vpack.c.bf16 %v260_v18, %v259_v17  ;;  %987 = vmatprep.subr.bf16.mxu0 %v986_v15  ;;  %v990_v24 = vpack.c.bf16 %v246_v22, %v245_v21  ;;  %v230_v25 = vld [vmem:[%s1196_s4 + $0x28] sm:$0xff]  ;;  %v261_v26 = vld [vmem:[%s1196_s4 + $0x120] sm:$0xff]  ;;  %v247_v29 = vld [vmem:[%s1196_s4 + $0xb0] sm:$0xff] }
  0x24   : > { %1017 = vmatpush3.bf16.msra.mxu1 %v1014_v11  ;;  %v262_v27 = vld [vmem:[%s1196_s4 + $0x128] sm:$0xff]  ;;  %v248_v30 = vld [vmem:[%s1196_s4 + $0xb8] sm:$0xff]  ;;  %v263_v31 = vld [vmem:[%s1196_s4 + $0x130] sm:$0xff]  ;;  %v992_v33 = vpack.c.bf16 %v230_v25, %v229_v23 }
  0x25   : > { %1019 = vmatprep.subr.bf16.mxu1 %v1018_v20  ;;  %v1022_v28 = vpack.c.bf16 %v262_v27, %v261_v26  ;;  %v264_v32 = vld [vmem:[%s1196_s4 + $0x138] sm:$0xff]  ;;  %v994_v34 = vpack.c.bf16 %v248_v30, %v247_v29  ;;  %v231_v35 = vld [vmem:[%s1196_s4 + $0x30] sm:$0xff]  ;;  %v249_v38 = vld [vmem:[%s1196_s4 + $0xc0] sm:$0xff] }
  0x26   : > { %989 = vmatpush3.bf16.msra.mxu0 %v988_v19  ;;  %v232_v36 = vld [vmem:[%s1196_s4 + $0x38] sm:$0xff]  ;;  %v1026_v37 = vpack.c.bf16 %v264_v32, %v263_v31  ;;  %v250_v39 = vld [vmem:[%s1196_s4 + $0xc8] sm:$0xff]  ;;  %v265_v40 = vld [vmem:[%s1196_s4 + $0x140] sm:$0xff] }
  0x27   : > { %991 = vmatprep.subr.bf16.mxu0 %v990_v24  ;;  %v266_v41 = vld [vmem:[%s1196_s4 + $0x148] sm:$0xff]  ;;  %v996_v42 = vpack.c.bf16 %v232_v36, %v231_v35  ;;  %v998_v43 = vpack.c.bf16 %v250_v39, %v249_v38  ;;  %v233_v44 = vld [vmem:[%s1196_s4 + $0x40] sm:$0xff]  ;;  %v251_v47 = vld [vmem:[%s1196_s4 + $0xd0] sm:$0xff] }
  0x28   : > { %1021 = vmatpush3.bf16.msra.mxu1 %v1018_v20  ;;  %v234_v45 = vld [vmem:[%s1196_s4 + $0x48] sm:$0xff]  ;;  %v1030_v46 = vpack.c.bf16 %v266_v41, %v265_v40  ;;  %v252_v48 = vld [vmem:[%s1196_s4 + $0xd8] sm:$0xff]  ;;  %v267_v49 = vld [vmem:[%s1196_s4 + $0x150] sm:$0xff] }
  0x29   : > { %1023 = vmatprep.subr.bf16.mxu1 %v1022_v28  ;;  %v268_v50 = vld [vmem:[%s1196_s4 + $0x158] sm:$0xff]  ;;  %v1000_v51 = vpack.c.bf16 %v234_v45, %v233_v44  ;;  %v1002_v52 = vpack.c.bf16 %v252_v48, %v251_v47  ;;  %v235_v53 = vld [vmem:[%s1196_s4 + $0x50] sm:$0xff]  ;;  %v253_v56 = vld [vmem:[%s1196_s4 + $0xe0] sm:$0xff] }
  0x2a   : > { %993 = vmatpush3.bf16.msra.mxu0 %v992_v33  ;;  %v236_v54 = vld [vmem:[%s1196_s4 + $0x58] sm:$0xff]  ;;  %v1034_v55 = vpack.c.bf16 %v268_v50, %v267_v49  ;;  %v254_v57 = vld [vmem:[%s1196_s4 + $0xe8] sm:$0xff]  ;;  %v269_v58 = vld [vmem:[%s1196_s4 + $0x160] sm:$0xff] }
  0x2b   : > { %995 = vmatprep.subr.bf16.mxu0 %v994_v34  ;;  %v270_v59 = vld [vmem:[%s1196_s4 + $0x168] sm:$0xff]  ;;  %v1004_v60 = vpack.c.bf16 %v236_v54, %v235_v53  ;;  %v1006_v61 = vpack.c.bf16 %v254_v57, %v253_v56  ;;  %v237_v62 = vld [vmem:[%s1196_s4 + $0x60] sm:$0xff]  ;;  %v255_v1 = vld [vmem:[%s1196_s4 + $0xf0] sm:$0xff] }
  0x2c   : > { %1025 = vmatpush3.bf16.msra.mxu1 %v1022_v28  ;;  %v238_v63 = vld [vmem:[%s1196_s4 + $0x68] sm:$0xff]  ;;  %v1038_v0 = vpack.c.bf16 %v270_v59, %v269_v58  ;;  %v256_v2 = vld [vmem:[%s1196_s4 + $0xf8] sm:$0xff]  ;;  %v271_v3 = vld [vmem:[%s1196_s4 + $0x170] sm:$0xff] }
  0x2d   : > { %1027 = vmatprep.subr.bf16.mxu1 %v1026_v37  ;;  %v272_v4 = vld [vmem:[%s1196_s4 + $0x178] sm:$0xff]  ;;  %v1008_v5 = vpack.c.bf16 %v238_v63, %v237_v62  ;;  %v1010_v6 = vpack.c.bf16 %v256_v2, %v255_v1  ;;  %v239_v7 = vld [vmem:[%s1196_s4 + $0x70] sm:$0xff]  ;;  %v289_v11 = vld [vmem:[%s1188_s28] sm:$0xff] }
  0x2e   : > { %997 = vmatpush3.bf16.msra.mxu0 %v996_v42  ;;  %v240_v8 = vld [vmem:[%s1196_s4 + $0x78] sm:$0xff]  ;;  %v1042_v9 = vpack.c.bf16 %v272_v4, %v271_v3  ;;  %v294_v12 = vld [vmem:[%s1188_s28 + $0x28] sm:$0xff]  ;;  %v293_v13 = vld [vmem:[%s1188_s28 + $0x20] sm:$0xff] }
  0x2f   : > { %999 = vmatprep.subr.bf16.mxu0 %v998_v43  ;;  %v1012_v10 = vpack.c.bf16 %v240_v8, %v239_v7  ;;  %v297_v14 = vld [vmem:[%s1188_s28 + $0x40] sm:$0xff]  ;;  %v292_v15 = vld [vmem:[%s1188_s28 + $0x18] sm:$0xff]  ;;  %v303_v18 = vld [vmem:[%s1188_s28 + $0x70] sm:$0xff] }
  0x30   : > { %1029 = vmatpush3.bf16.msra.mxu1 %v1026_v37  ;;  %v296_v16 = vld [vmem:[%s1188_s28 + $0x38] sm:$0xff]  ;;  %v295_v19 = vld [vmem:[%s1188_s28 + $0x30] sm:$0xff]  ;;  %v306_v21 = vld [vmem:[%s1188_s28 + $0x88] sm:$0xff] }
  0x31   : > { %1031 = vmatprep.subr.bf16.mxu1 %v1030_v46  ;;  %v300_v17 = vld [vmem:[%s1188_s28 + $0x58] sm:$0xff]  ;;  %v299_v20 = vld [vmem:[%s1188_s28 + $0x50] sm:$0xff]  ;;  %v309_v22 = vld [vmem:[%s1188_s28 + $0xa0] sm:$0xff] }
  0x32   : > { %1001 = vmatpush3.bf16.msra.mxu0 %v1000_v51  ;;  %v298_v23 = vld [vmem:[%s1188_s28 + $0x48] sm:$0xff]  ;;  %v312_v25 = vld [vmem:[%s1188_s28 + $0xb8] sm:$0xff]  ;;  %v315_v26 = vld [vmem:[%s1188_s28 + $0xd0] sm:$0xff] }
  0x33   : > { %1003 = vmatprep.subr.bf16.mxu0 %v1002_v52  ;;  %v302_v24 = vld [vmem:[%s1188_s28 + $0x68] sm:$0xff]  ;;  %v301_v27 = vld [vmem:[%s1188_s28 + $0x60] sm:$0xff]  ;;  %v304_v31 = vld [vmem:[%s1188_s28 + $0x78] sm:$0xff] }
  0x34   : > { %1033 = vmatpush3.bf16.msra.mxu1 %v1030_v46  ;;  %v305_v28 = vld [vmem:[%s1188_s28 + $0x80] sm:$0xff]  ;;  %v318_v29 = vld [vmem:[%s1188_s28 + $0xe8] sm:$0xff]  ;;  %v308_v32 = vld [vmem:[%s1188_s28 + $0x98] sm:$0xff] }
  0x35   : > { %1035 = vmatprep.subr.bf16.mxu1 %v1034_v55  ;;  %v321_v30 = vld [vmem:[%s1188_s28 + $0x100] sm:$0xff]  ;;  %v324_v33 = vld [vmem:[%s1188_s28 + $0x118] sm:$0xff]  ;;  %v327_v34 = vld [vmem:[%s1188_s28 + $0x130] sm:$0xff] }
  0x36   : > { %1005 = vmatpush3.bf16.msra.mxu0 %v1004_v60  ;;  %v307_v35 = vld [vmem:[%s1188_s28 + $0x90] sm:$0xff]  ;;  %v330_v37 = vld [vmem:[%s1188_s28 + $0x148] sm:$0xff]  ;;  %v333_v38 = vld [vmem:[%s1188_s28 + $0x160] sm:$0xff] }
  0x37   : > { %1007 = vmatprep.subr.bf16.mxu0 %v1006_v61  ;;  %v311_v36 = vld [vmem:[%s1188_s28 + $0xb0] sm:$0xff]  ;;  %v310_v39 = vld [vmem:[%s1188_s28 + $0xa8] sm:$0xff]  ;;  %v336_v41 = vld [vmem:[%s1188_s28 + $0x178] sm:$0xff] }
  0x38   : > { %1037 = vmatpush3.bf16.msra.mxu1 %v1034_v55  ;;  %v314_v40 = vld [vmem:[%s1188_s28 + $0xc8] sm:$0xff]  ;;  %v313_v42 = vld [vmem:[%s1188_s28 + $0xc0] sm:$0xff]  ;;  %v316_v44 = vld [vmem:[%s1188_s28 + $0xd8] sm:$0xff] }
  0x39   : > { %1039 = vmatprep.subr.bf16.mxu1 %v1038_v0  ;;  %v317_v43 = vld [vmem:[%s1188_s28 + $0xe0] sm:$0xff]  ;;  %v320_v45 = vld [vmem:[%s1188_s28 + $0xf8] sm:$0xff]  ;;  %v319_v46 = vld [vmem:[%s1188_s28 + $0xf0] sm:$0xff] }
  0x3a   : > { %1009 = vmatpush3.bf16.msra.mxu0 %v1008_v5  ;;  %v323_v47 = vld [vmem:[%s1188_s28 + $0x110] sm:$0xff]  ;;  %v322_v48 = vld [vmem:[%s1188_s28 + $0x108] sm:$0xff]  ;;  %v325_v50 = vld [vmem:[%s1188_s28 + $0x120] sm:$0xff] }
  0x3b   : > { %1011 = vmatprep.subr.bf16.mxu0 %v1010_v6  ;;  %v326_v49 = vld [vmem:[%s1188_s28 + $0x128] sm:$0xff]  ;;  %v329_v51 = vld [vmem:[%s1188_s28 + $0x140] sm:$0xff]  ;;  %v328_v52 = vld [vmem:[%s1188_s28 + $0x138] sm:$0xff] }
  0x3c   : > { %1041 = vmatpush3.bf16.msra.mxu1 %v1038_v0  ;;  %v332_v53 = vld [vmem:[%s1188_s28 + $0x158] sm:$0xff]  ;;  %v331_v54 = vld [vmem:[%s1188_s28 + $0x150] sm:$0xff]  ;;  %v334_v56 = vld [vmem:[%s1188_s28 + $0x168] sm:$0xff] }
  0x3d   : > { %1043 = vmatprep.subr.bf16.mxu1 %v1042_v9  ;;  %v335_v55 = vld [vmem:[%s1188_s28 + $0x170] sm:$0xff]  ;;  %v273_v62 = vld [vmem:[#allocation2] sm:$0xff]  ;;  %v274_v6 = vld [vmem:[#allocation2 + $0x8] sm:$0xff] }
  0x3e   : > { %1013 = vmatpush3.bf16.msra.mxu0 %v1012_v10 }
  0x40   : > { %1045 = vmatpush3.bf16.msra.mxu1 %v1042_v9 }
  0x41   : > { %402 = vmatmul.mubr.f32.vlgmr.msra.gmra.mrb[0].mxu0 %v289_v11 }
  0x42   : > { %406 = vmatprep.mubr.f32.mxu0 %v293_v13 }
  0x43   : > { %959 = vmatmul.mubr.f32.vlgmr.msra.gmra.mrb[0].mxu1 %v294_v12 }
  0x44   : > { %961 = vmatprep.mubr.f32.mxu1 %v297_v14  ;;  %v275_v14 = vld [vmem:[#allocation2 + $0x10] sm:$0xff] }
  0x45   : > { %407 = vmatmul.mubr.f32.gmra.mrb[2].mxu0 %v292_v15 }
  0x46   : > { %411 = vmatprep.mubr.f32.mxu0 %v296_v16 }
  0x47   : > { %962 = vmatmul.mubr.f32.gmra.mrb[2].mxu1 %v300_v17 }
  0x48   : > { %964 = vmatprep.mubr.f32.mxu1 %v303_v18 }
  0x49   : > { %412 = vmatmul.mubr.f32.gmra.mrb[4].mxu0 %v295_v19 }
  0x4a   : > { %416 = vmatprep.mubr.f32.mxu0 %v299_v20 }
  0x4b   : > { %965 = vmatmul.mubr.f32.gmra.mrb[4].mxu1 %v306_v21 }
  0x4c   : > { %967 = vmatprep.mubr.f32.mxu1 %v309_v22  ;;  %v276_v22 = vld [vmem:[#allocation2 + $0x18] sm:$0xff] }
  0x4d   : > { %417 = vmatmul.mubr.f32.gmra.mrb[6].mxu0 %v298_v23 }
  0x4e   : > { %421 = vmatprep.mubr.f32.mxu0 %v302_v24 }
  0x4f   : > { %968 = vmatmul.mubr.f32.gmra.mrb[6].mxu1 %v312_v25 }
  0x50   : > { %970 = vmatprep.mubr.f32.mxu1 %v315_v26 }
  0x51   : > { %422 = vmatmul.mubr.f32.gmra.mrb[8].mxu0 %v301_v27 }
  0x52   : > { %426 = vmatprep.mubr.f32.mxu0 %v305_v28 }
  0x53   : > { %971 = vmatmul.mubr.f32.gmra.mrb[8].mxu1 %v318_v29 }
  0x54   : > { %973 = vmatprep.mubr.f32.mxu1 %v321_v30  ;;  %v277_v30 = vld [vmem:[#allocation2 + $0x20] sm:$0xff] }
  0x55   : > { %427 = vmatmul.mubr.f32.gmra.mrb[10].mxu0 %v304_v31 }
  0x56   : > { %431 = vmatprep.mubr.f32.mxu0 %v308_v32 }
  0x57   : > { %974 = vmatmul.mubr.f32.gmra.mrb[10].mxu1 %v324_v33 }
  0x58   : > { %976 = vmatprep.mubr.f32.mxu1 %v327_v34 }
  0x59   : > { %432 = vmatmul.mubr.f32.gmra.mrb[12].mxu0 %v307_v35 }
  0x5a   : > { %436 = vmatprep.mubr.f32.mxu0 %v311_v36 }
  0x5b   : > { %977 = vmatmul.mubr.f32.gmra.mrb[12].mxu1 %v330_v37 }
  0x5c   : > { %979 = vmatprep.mubr.f32.mxu1 %v333_v38  ;;  %v278_v38 = vld [vmem:[#allocation2 + $0x28] sm:$0xff] }
  0x5d   : > { %437 = vmatmul.mubr.f32.gmra.mrb[14].mxu0 %v310_v39 }
  0x5e   : > { %441 = vmatprep.mubr.f32.mxu0 %v314_v40 }
  0x5f   : > { %980 = vmatmul.mubr.f32.gmra.mrb[14].mxu1 %v336_v41 }
  0x61   : > { %442 = vmatmul.mubr.f32.gmra.mrb[16].mxu0 %v313_v42 }
  0x62   : > { %446 = vmatprep.mubr.f32.mxu0 %v317_v43 }
  0x65   : > { %447 = vmatmul.mubr.f32.gmra.mrb[18].mxu0 %v316_v44 }
  0x66   : > { %451 = vmatprep.mubr.f32.mxu0 %v320_v45 }
  0x69   : > { %452 = vmatmul.mubr.f32.gmra.mrb[20].mxu0 %v319_v46  ;;  %v279_v46 = vld [vmem:[#allocation2 + $0x30] sm:$0xff] }
  0x6a   : > { %456 = vmatprep.mubr.f32.mxu0 %v323_v47 }
  0x6d   : > { %457 = vmatmul.mubr.f32.gmra.mrb[22].mxu0 %v322_v48 }
  0x6e   : > { %461 = vmatprep.mubr.f32.mxu0 %v326_v49 }
  0x71   : > { %462 = vmatmul.mubr.f32.gmra.mrb[24].mxu0 %v325_v50 }
  0x72   : > { %466 = vmatprep.mubr.f32.mxu0 %v329_v51 }
  0x75   : > { %467 = vmatmul.mubr.f32.gmra.mrb[26].mxu0 %v328_v52 }
  0x76   : > { %471 = vmatprep.mubr.f32.mxu0 %v332_v53 }
  0x79   : > { %472 = vmatmul.mubr.f32.gmra.mrb[28].mxu0 %v331_v54  ;;  %v280_v54 = vld [vmem:[#allocation2 + $0x38] sm:$0xff] }
  0x7a   : > { %476 = vmatprep.mubr.f32.mxu0 %v335_v55 }
  0x7d   : > { %477 = vmatmul.mubr.f32.gmra.mrb[30].mxu0 %v334_v56 }
 0x114   : > { %v846_v57 = vpop.f32.mrb[0].mxu0 }
 0x115   : > { %v847_v58 = vpop.f32.mrb[1].mxu0 }
 0x116   : > { %v960_v59 = vpop.f32.mrb[0].mxu1  ;;  %v848_v60 = vadd.f32 %v847_v58, %v846_v57 }
 0x117   : > { %v548_v61 = vpop.f32.mrb[1].mxu1 }
 0x118   : > { %v549_v63 = vadd.f32 %v848_v60, %v548_v61  ;;  %v849_v0 = vpop.f32.mrb[2].mxu0  ;;  %v281_v60 = vld [vmem:[#allocation2 + $0x40] sm:$0xff] }
 0x119   : > { %v850_v1 = vpop.f32.mrb[3].mxu0 }
 0x11a   : > { %v963_v2 = vpop.f32.mrb[2].mxu1  ;;  %v627_v3 = vadd.f32 %v549_v63, %v273_v62  ;;  %v851_v4 = vadd.f32 %v850_v1, %v849_v0 }
 0x11b   : > { %v558_v5 = vpop.f32.mrb[3].mxu1 }
 0x11c   : > { %643 = vst [vmem:[#allocation2] sm:$0xff] %v627_v3  ;;  %v554_v7 = vadd.f32 %v960_v59, %v851_v4  ;;  %v852_v8 = vpop.f32.mrb[4].mxu0 }
 0x11d   : > { %v853_v9 = vpop.f32.mrb[5].mxu0 }
 0x11e   : > { %v966_v10 = vpop.f32.mrb[4].mxu1  ;;  %v628_v11 = vadd.f32 %v554_v7, %v274_v6  ;;  %v854_v12 = vadd.f32 %v853_v9, %v852_v8  ;;  %v283_v8 = vld [vmem:[#allocation2 + $0x50] sm:$0xff] }
 0x11f   : > { %v568_v13 = vpop.f32.mrb[5].mxu1 }
 0x120   : > { %644 = vst [vmem:[#allocation2 + $0x8] sm:$0xff] %v628_v11  ;;  %v559_v15 = vadd.f32 %v854_v12, %v558_v5  ;;  %v855_v16 = vpop.f32.mrb[6].mxu0 }
 0x121   : > { %v856_v17 = vpop.f32.mrb[7].mxu0 }
 0x122   : > { %v969_v18 = vpop.f32.mrb[6].mxu1  ;;  %v629_v19 = vadd.f32 %v559_v15, %v275_v14  ;;  %v857_v20 = vadd.f32 %v856_v17, %v855_v16  ;;  %v284_v14 = vld [vmem:[#allocation2 + $0x58] sm:$0xff] }
 0x123   : > { %v578_v21 = vpop.f32.mrb[7].mxu1 }
 0x124   : > { %645 = vst [vmem:[#allocation2 + $0x10] sm:$0xff] %v629_v19  ;;  %v564_v23 = vadd.f32 %v963_v2, %v857_v20  ;;  %v858_v24 = vpop.f32.mrb[8].mxu0  ;;  %v282_v2 = vld [vmem:[#allocation2 + $0x48] sm:$0xff]  ;;  %v285_v20 = vld [vmem:[#allocation2 + $0x60] sm:$0xff] }
 0x125   : > { %v859_v25 = vpop.f32.mrb[9].mxu0 }
 0x126   : > { %v972_v26 = vpop.f32.mrb[8].mxu1  ;;  %v630_v27 = vadd.f32 %v564_v23, %v276_v22  ;;  %v860_v28 = vadd.f32 %v859_v25, %v858_v24 }
 0x127   : > { %v588_v29 = vpop.f32.mrb[9].mxu1 }
 0x128   : > { %646 = vst [vmem:[#allocation2 + $0x18] sm:$0xff] %v630_v27  ;;  %v569_v31 = vadd.f32 %v860_v28, %v568_v13  ;;  %v861_v32 = vpop.f32.mrb[10].mxu0 }
 0x129   : > { %v862_v33 = vpop.f32.mrb[11].mxu0 }
 0x12a   : > { %v975_v34 = vpop.f32.mrb[10].mxu1  ;;  %v631_v35 = vadd.f32 %v569_v31, %v277_v30  ;;  %v863_v36 = vadd.f32 %v862_v33, %v861_v32  ;;  %v287_v32 = vld [vmem:[#allocation2 + $0x70] sm:$0xff] }
 0x12b   : > { %v598_v37 = vpop.f32.mrb[11].mxu1 }
 0x12c   : > { %647 = vst [vmem:[#allocation2 + $0x20] sm:$0xff] %v631_v35  ;;  %v574_v39 = vadd.f32 %v966_v10, %v863_v36  ;;  %v864_v40 = vpop.f32.mrb[12].mxu0 }
 0x12d   : > { %v865_v41 = vpop.f32.mrb[13].mxu0 }
 0x12e   : > { %v978_v42 = vpop.f32.mrb[12].mxu1  ;;  %v632_v43 = vadd.f32 %v574_v39, %v278_v38  ;;  %v866_v44 = vadd.f32 %v865_v41, %v864_v40  ;;  %v288_v38 = vld [vmem:[#allocation2 + $0x78] sm:$0xff]  ;;  %v664_v41 = vld [vmem:[#allocation2] sm:$0xff] (%p659_p8) }
 0x12f   : > { %v608_v45 = vpop.f32.mrb[13].mxu1 }
 0x130   : > { %648 = vst [vmem:[#allocation2 + $0x28] sm:$0xff] %v632_v43  ;;  %v579_v47 = vadd.f32 %v866_v44, %v578_v21  ;;  %v867_v48 = vpop.f32.mrb[14].mxu0  ;;  %v666_v43 = vld [vmem:[#allocation2 + $0x10] sm:$0xff] (%p659_p8)  ;;  %v680_v44 = vmax.f32 (%p659_p8), %v664_v41, 0.0 }
 0x131   : > { %v868_v49 = vpop.f32.mrb[15].mxu0 }
 0x132   : > { %v981_v50 = vpop.f32.mrb[14].mxu1  ;;  %v633_v51 = vadd.f32 %v579_v47, %v279_v46  ;;  %v869_v52 = vadd.f32 %v868_v49, %v867_v48  ;;  %v682_v46 = vmax.f32 (%p659_p8), %v666_v43, 0.0  ;;  %v667_v47 = vld [vmem:[#allocation2 + $0x18] sm:$0xff] (%p659_p8)  ;;  %696 = vst [vmem:[%s1183_s23] sm:$0xff] (%p659_p8), %v680_v44 }
 0x133   : > { %v618_v53 = vpop.f32.mrb[15].mxu1  ;;  %v668_v48 = vld [vmem:[#allocation2 + $0x20] sm:$0xff] (%p659_p8) }
 0x134   : > { %649 = vst [vmem:[#allocation2 + $0x30] sm:$0xff] %v633_v51  ;;  %v584_v55 = vadd.f32 %v969_v18, %v869_v52  ;;  %v870_v56 = vpop.f32.mrb[16].mxu0  ;;  %v683_v51 = vmax.f32 (%p659_p8), %v667_v47, 0.0  ;;  %698 = vst [vmem:[%s1183_s23 + $0x10] sm:$0xff] (%p659_p8), %v682_v46 }
 0x135   : > { %v871_v57 = vpop.f32.mrb[17].mxu0 }
 0x136   : > { %v634_v58 = vadd.f32 %v584_v55, %v280_v54  ;;  %v872_v59 = vadd.f32 %v871_v57, %v870_v56  ;;  %699 = vst [vmem:[%s1183_s23 + $0x18] sm:$0xff] (%p659_p8), %v683_v51 }
 0x137   : > { %v669_v49 = vld [vmem:[#allocation2 + $0x28] sm:$0xff] (%p659_p8) }
 0x138   : > { %650 = vst [vmem:[#allocation2 + $0x38] sm:$0xff] %v634_v58  ;;  %v589_v61 = vadd.f32 %v872_v59, %v588_v29  ;;  %v873_v62 = vpop.f32.mrb[18].mxu0  ;;  %v685_v52 = vmax.f32 (%p659_p8), %v669_v49, 0.0 }
 0x139   : > { %v874_v63 = vpop.f32.mrb[19].mxu0 }
 0x13a   : > { %v635_v0 = vadd.f32 %v589_v61, %v281_v60  ;;  %v875_v1 = vadd.f32 %v874_v63, %v873_v62  ;;  %701 = vst [vmem:[%s1183_s23 + $0x28] sm:$0xff] (%p659_p8), %v685_v52 }
 0x13c   : > { %651 = vst [vmem:[#allocation2 + $0x40] sm:$0xff] %v635_v0  ;;  %v594_v3 = vadd.f32 %v972_v26, %v875_v1  ;;  %v876_v4 = vpop.f32.mrb[20].mxu0  ;;  %v286_v26 = vld [vmem:[#allocation2 + $0x68] sm:$0xff] }
 0x13d   : > { %v877_v5 = vpop.f32.mrb[21].mxu0 }
 0x13e   : > { %v636_v6 = vadd.f32 %v594_v3, %v282_v2  ;;  %v878_v7 = vadd.f32 %v877_v5, %v876_v4 }
 0x13f   : > { %v671_v54 = vld [vmem:[#allocation2 + $0x38] sm:$0xff] (%p659_p8) }
 0x140   : > { %652 = vst [vmem:[#allocation2 + $0x48] sm:$0xff] %v636_v6  ;;  %v599_v9 = vadd.f32 %v878_v7, %v598_v37  ;;  %v879_v10 = vpop.f32.mrb[22].mxu0  ;;  %v687_v57 = vmax.f32 (%p659_p8), %v671_v54, 0.0 }
 0x141   : > { %v880_v11 = vpop.f32.mrb[23].mxu0 }
 0x142   : > { %v637_v12 = vadd.f32 %v599_v9, %v283_v8  ;;  %v881_v13 = vadd.f32 %v880_v11, %v879_v10  ;;  %703 = vst [vmem:[%s1183_s23 + $0x38] sm:$0xff] (%p659_p8), %v687_v57 }
 0x143   : > { %v672_v55 = vld [vmem:[#allocation2 + $0x40] sm:$0xff] (%p659_p8) }
 0x144   : > { %653 = vst [vmem:[#allocation2 + $0x50] sm:$0xff] %v637_v12  ;;  %v604_v15 = vadd.f32 %v975_v34, %v881_v13  ;;  %v882_v16 = vpop.f32.mrb[24].mxu0  ;;  %v688_v58 = vmax.f32 (%p659_p8), %v672_v55, 0.0 }
 0x145   : > { %v883_v17 = vpop.f32.mrb[25].mxu0 }
 0x146   : > { %v638_v18 = vadd.f32 %v604_v15, %v284_v14  ;;  %v884_v19 = vadd.f32 %v883_v17, %v882_v16  ;;  %704 = vst [vmem:[%s1183_s23 + $0x40] sm:$0xff] (%p659_p8), %v688_v58 }
 0x147   : > { %v673_v59 = vld [vmem:[#allocation2 + $0x48] sm:$0xff] (%p659_p8) }
 0x148   : > { %654 = vst [vmem:[#allocation2 + $0x58] sm:$0xff] %v638_v18  ;;  %v609_v21 = vadd.f32 %v884_v19, %v608_v45  ;;  %v885_v22 = vpop.f32.mrb[26].mxu0  ;;  %v689_v62 = vmax.f32 (%p659_p8), %v673_v59, 0.0 }
 0x149   : > { %v886_v23 = vpop.f32.mrb[27].mxu0 }
 0x14a   : > { %v639_v24 = vadd.f32 %v609_v21, %v285_v20  ;;  %v887_v25 = vadd.f32 %v886_v23, %v885_v22  ;;  %705 = vst [vmem:[%s1183_s23 + $0x48] sm:$0xff] (%p659_p8), %v689_v62 }
 0x14b   : > { %v674_v60 = vld [vmem:[#allocation2 + $0x50] sm:$0xff] (%p659_p8) }
 0x14c   : > { %655 = vst [vmem:[#allocation2 + $0x60] sm:$0xff] %v639_v24  ;;  %v614_v27 = vadd.f32 %v978_v42, %v887_v25  ;;  %v888_v28 = vpop.f32.mrb[28].mxu0  ;;  %v665_v42 = vld [vmem:[#allocation2 + $0x8] sm:$0xff] (%p659_p8)  ;;  %v690_v63 = vmax.f32 (%p659_p8), %v674_v60, 0.0 }
 0x14d   : > { %v889_v29 = vpop.f32.mrb[29].mxu0  ;;  %v681_v45 = vmax.f32 (%p659_p8), %v665_v42, 0.0 }
 0x14e   : > { %v640_v30 = vadd.f32 %v614_v27, %v286_v26  ;;  %v890_v31 = vadd.f32 %v889_v29, %v888_v28  ;;  %706 = vst [vmem:[%s1183_s23 + $0x50] sm:$0xff] (%p659_p8), %v690_v63 }
 0x14f   : > { %697 = vst [vmem:[%s1183_s23 + $0x8] sm:$0xff] (%p659_p8), %v681_v45  ;;  %v675_v61 = vld [vmem:[#allocation2 + $0x58] sm:$0xff] (%p659_p8) }
 0x150   : > { %656 = vst [vmem:[#allocation2 + $0x68] sm:$0xff] %v640_v30  ;;  %v619_v33 = vadd.f32 %v890_v31, %v618_v53  ;;  %v891_v34 = vpop.f32.mrb[30].mxu0  ;;  %v670_v53 = vld [vmem:[#allocation2 + $0x30] sm:$0xff] (%p659_p8)  ;;  %v691_v0 = vmax.f32 (%p659_p8), %v675_v61, 0.0 }
 0x151   : > { %v892_v35 = vpop.f32.mrb[31].mxu0  ;;  %v686_v56 = vmax.f32 (%p659_p8), %v670_v53, 0.0 }
 0x152   : > { %v641_v36 = vadd.f32 %v619_v33, %v287_v32  ;;  %v893_v37 = vadd.f32 %v892_v35, %v891_v34  ;;  %663 = sbr.rel (!%p659_p8) target bundleno = 355 (0x163), region = 36  ;;  %707 = vst [vmem:[%s1183_s23 + $0x58] sm:$0xff] (%p659_p8), %v691_v0 }
 0x153   : > { %v676_v1 = vld [vmem:[#allocation2 + $0x60] sm:$0xff] (%p659_p8)  ;;  %702 = vst [vmem:[%s1183_s23 + $0x30] sm:$0xff] (%p659_p8), %v686_v56 }
 0x154   : > { %657 = vst [vmem:[#allocation2 + $0x70] sm:$0xff] %v641_v36  ;;  %v624_v39 = vadd.f32 %v981_v50, %v893_v37  ;;  %v684_v50 = vmax.f32 (%p659_p8), %v668_v48, 0.0  ;;  %v692_v4 = vmax.f32 (%p659_p8), %v676_v1, 0.0 }
 0x156   : > { %v642_v40 = vadd.f32 %v624_v39, %v288_v38  ;;  %700 = vst [vmem:[%s1183_s23 + $0x20] sm:$0xff] (%p659_p8), %v684_v50  ;;  %708 = vst [vmem:[%s1183_s23 + $0x60] sm:$0xff] (%p659_p8), %v692_v4 }
 0x157   : > { %v677_v2 = vld [vmem:[#allocation2 + $0x68] sm:$0xff] (%p659_p8) }
 0x158   : > { %658 = vst [vmem:[#allocation2 + $0x78] sm:$0xff] %v642_v40  ;;  %v693_v5 = vmax.f32 (%p659_p8), %v677_v2, 0.0 }
 0x15a   : > { %709 = vst [vmem:[%s1183_s23 + $0x68] sm:$0xff] %v693_v5 }
 0x15b   : > { %v678_v3 = vld [vmem:[#allocation2 + $0x70] sm:$0xff] }
 0x15c   : > { %v694_v6 = vmax.f32 %v678_v3, 0.0 }
 0x15e   : > { %710 = vst [vmem:[%s1183_s23 + $0x70] sm:$0xff] %v694_v6 }
 0x15f   : > { %v679_v7 = vld [vmem:[#allocation2 + $0x78] sm:$0xff] }
 0x160   : > { %v695_v8 = vmax.f32 %v679_v7, 0.0 }
 0x162   : > { %711 = vst [vmem:[%s1183_s23 + $0x78] sm:$0xff] %v695_v8 }
 0x163 PF: > { %s12_s13 = sadd.s32 1, %s1127_s13   ;;  %s1329_s9 = smov %s1119_s11 }
 0x164   : > { %p9_p9 = scmp.ge.s32.totalorder %s12_s13, 8   ;;  %s1330_s10 = smov %s1123_s12 }
 0x165   : > { %s1331_s11 = smov %s1334_s14  ;;  %s1332_s12 = smov %s1338_s15 }
 0x166   :  { %11 = sbr.rel (!%p9_p9) target bundleno = 3 (0x3), region = 67 }

</bundles_post_ra>
